<compile_context>
chip_gen: v6e
topology: v6e:2x2x1
jax: 0.10.0
libtpu: 0.0.40
codegen_flags: <defaults>
</compile_context>

<pallas_src>
import jax
import jax.numpy as jnp
from jax.experimental import pallas as pl
from jax.experimental.pallas import tpu as pltpu


# ----------------------------- Pallas kernel -------------------------------

def _rendering_mlp_kernel(pts_ref, dirs_ref, nrm_ref, feat_ref,
                          w0p_ref, w0d_ref, w0n_ref, w0f_ref, b0_ref,
                          w1_ref, b1_ref,
                          w2_ref, b2_ref,
                          o_ref):
    """3-layer MLP (ReLU, ReLU, Sigmoid) on one tile of points.

    Layer 0 is computed as four partial dots (one per input stream), which is
    mathematically identical to concat([pts, dirs, nrm, feat]) @ w0 but avoids
    the concat entirely. Matmul operands are bf16; accumulation is f32.
    Output is stored transposed (D_OUT, tile_n) for lane-dense writeback.
    """
    f32 = jnp.float32
    bf16 = jnp.bfloat16

    # ---- layer 0: split-weight partial dots (fused concat) ----
    h0 = jnp.dot(pts_ref[...].astype(bf16), w0p_ref[...],
                 preferred_element_type=f32)
    h0 = h0 + jnp.dot(dirs_ref[...].astype(bf16), w0d_ref[...],
                      preferred_element_type=f32)
    h0 = h0 + jnp.dot(nrm_ref[...].astype(bf16), w0n_ref[...],
                      preferred_element_type=f32)
    h0 = h0 + jnp.dot(feat_ref[...].astype(bf16), w0f_ref[...],
                      preferred_element_type=f32)
    h0 = jnp.maximum(h0 + b0_ref[...], 0.0)            # bias + ReLU in f32

    # ---- layer 1 ----
    h1 = jnp.dot(h0.astype(bf16), w1_ref[...], preferred_element_type=f32)
    h1 = jnp.maximum(h1 + b1_ref[...], 0.0)

    # ---- layer 2 + sigmoid ----
    y = jnp.dot(h1.astype(bf16), w2_ref[...], preferred_element_type=f32)
    y = jax.nn.sigmoid(y + b2_ref[...])                 # (tile_n, D_OUT) f32

    # Lane-dense store: (D_OUT, tile_n) with last dim a multiple of 128.
    o_ref[...] = y.T


# ------------------------------- wrapper ------------------------------------

def _round_up(x, m):
    return ((x + m - 1) // m) * m


def rendering_network_forward(points, normals, view_dirs, feature_vectors,
                              params, *, tile_n=2048):
    """mode='idr': rendering_input = cat([points, view_dirs, normals, feats], -1),
    but the concat is fused into the kernel via split layer-0 weights."""
    (w0, b0), (w1, b1), (w2, b2) = params     # w: (in, out) f32, b: (1, out) f32
    N = points.shape[0]
    D_FEAT = feature_vectors.shape[1]
    D0 = w0.shape[0]
    H0, H1 = w0.shape[1], w1.shape[1]
    D_OUT = w2.shape[1]

    # Adapt tile size to the problem and zero-pad N up to a multiple of it.
    tile_n = max(128, min(tile_n, _round_up(N, 128)))
    n_pad = _round_up(N, tile_n)

    def prep(a):
        a = a.astype(jnp.float32)
        if n_pad != N:
            a = jnp.pad(a, ((0, n_pad - N), (0, 0)))
        return a

    pts = prep(points)
    dirs = prep(view_dirs)
    nrm = prep(normals)
    feat = prep(feature_vectors)

    # bf16 weights for the MXU (tiny; cast once in the wrapper). Biases stay f32.
    w0b = w0.astype(jnp.bfloat16)
    w0p, w0d, w0n, w0f = w0b[0:3], w0b[3:6], w0b[6:9], w0b[9:]
    w1b = w1.astype(jnp.bfloat16)
    w2b = w2.astype(jnp.bfloat16)
    b0f = b0.astype(jnp.float32)
    b1f = b1.astype(jnp.float32)
    b2f = b2.astype(jnp.float32)

    grid = (n_pad // tile_n,)

    def const_spec(shape):
        # Full-array block, same tile every step (weights stay VMEM-resident).
        return pl.BlockSpec(shape, lambda i: (0,) * len(shape))

    flops = 2 * n_pad * (D0 * H0 + H0 * H1 + H1 * D_OUT)
    bytes_accessed = (n_pad * D0 * 4                      # f32 inputs
                      + n_pad * D_OUT * 4                 # f32 output
                      + (w0b.size + w1b.size + w2b.size) * 2
                      + (b0f.size + b1f.size + b2f.size) * 4)
    cost = pl.CostEstimate(flops=flops,
                           transcendentals=n_pad * D_OUT,
                           bytes_accessed=int(bytes_accessed))

    out_t = pl.pallas_call(
        _rendering_mlp_kernel,
        out_shape=jax.ShapeDtypeStruct((D_OUT, n_pad), jnp.float32),
        grid=grid,
        in_specs=[
            pl.BlockSpec((tile_n, 3), lambda i: (i, 0)),        # points
            pl.BlockSpec((tile_n, 3), lambda i: (i, 0)),        # view_dirs
            pl.BlockSpec((tile_n, 3), lambda i: (i, 0)),        # normals
            pl.BlockSpec((tile_n, D_FEAT), lambda i: (i, 0)),   # features
            const_spec(w0p.shape), const_spec(w0d.shape),
            const_spec(w0n.shape), const_spec(w0f.shape), const_spec(b0f.shape),
            const_spec(w1b.shape), const_spec(b1f.shape),
            const_spec(w2b.shape), const_spec(b2f.shape),
        ],
        out_specs=pl.BlockSpec((D_OUT, tile_n), lambda i: (0, i)),
        compiler_params=pltpu.CompilerParams(
            dimension_semantics=("parallel",)),
        cost_estimate=cost,
    )(pts, dirs, nrm, feat,
      w0p, w0d, w0n, w0f, b0f,
      w1b, b1f, w2b, b2f)

    # Layout plumbing back to the module's (N, D_OUT) convention.
    return out_t[:, :N].T


# ------------------------ deterministic parameter init ----------------------

def _weight_norm_effective(v, g):
    """nn.utils.weight_norm(Linear) with dim=0:
       w[o, i] = g[o] * v[o, i] / ||v[o, :]||"""
    norm = jnp.sqrt(jnp.sum(v * v, axis=1, keepdims=True))
    return g[:, None] * v / norm


def make_params(key, layer_dims):
    """layer_dims = [D0, H0, H1, D_OUT]; returns [(w_in_out, b_1xout), ...]."""
    params = []
    for l in range(len(layer_dims) - 1):
        d_in, d_out = layer_dims[l], layer_dims[l + 1]
        key, kv, kg, kb = jax.random.split(key, 4)
        bound = 1.0 / jnp.sqrt(d_in)
        v = jax.random.uniform(kv, (d_out, d_in), jnp.float32, -bound, bound)
        g = jax.random.uniform(kg, (d_out,), jnp.float32, 0.5, 1.5)
        b = jax.random.uniform(kb, (d_out,), jnp.float32, -bound, bound)
        w_eff = _weight_norm_effective(v, g)           # (out, in), PyTorch layout
        params.append((w_eff.T, b[None, :]))           # kernel wants (in,out),(1,out)
    return params


# ------------------------------ pure-JAX references --------------------------

def reference_forward_f32(points, normals, view_dirs, feature_vectors, params):
    x = jnp.concatenate([points, view_dirs, normals, feature_vectors],
                        axis=-1).astype(jnp.float32)
    n_layers = len(params)
    for l, (w, b) in enumerate(params):
        x = x @ w + b
        if l < n_layers - 1:
            x = jnp.maximum(x, 0.0)
    return jax.nn.sigmoid(x)


def reference_forward_bf16(points, normals, view_dirs, feature_vectors, params):
    """Matches the kernel's numerics: bf16 matmul operands, f32 accumulation."""
    x = jnp.concatenate([points, view_dirs, normals, feature_vectors],
                        axis=-1).astype(jnp.float32)
    n_layers = len(params)
    for l, (w, b) in enumerate(params):
        x = jnp.dot(x.astype(jnp.bfloat16), w.astype(jnp.bfloat16),
                    preferred_element_type=jnp.float32) + b
        if l < n_layers - 1:
            x = jnp.maximum(x, 0.0)
    return jax.nn.sigmoid(x)


# ----------------------------------- main ------------------------------------

if __name__ == "__main__":
    FEATURE_SIZE = 32
    D_IN = 9            # points(3) + view_dirs(3) + normals(3)
    D_OUT = 3
    HIDDEN = [64, 64]
    LAYER_DIMS = [D_IN + FEATURE_SIZE] + HIDDEN + [D_OUT]   # [41, 64, 64, 3]
    N = 256             # number of points (small demo size)

    key = jax.random.PRNGKey(0)
    kpts, knrm, kdir, kfeat, kparam = jax.random.split(key, 5)

    points = jax.random.normal(kpts, (N, 3), jnp.float32)
    normals = jax.random.normal(knrm, (N, 3), jnp.float32)
    view_dirs = jax.random.normal(kdir, (N, 3), jnp.float32)
    feature_vectors = jax.random.normal(kfeat, (N, FEATURE_SIZE), jnp.float32)

    params = make_params(kparam, LAYER_DIMS)

    out = rendering_network_forward(points, normals, view_dirs,
                                    feature_vectors, params)
    out = jax.block_until_ready(out)

    ref_bf16 = reference_forward_bf16(points, normals, view_dirs,
                                      feature_vectors, params)
    ref_f32 = reference_forward_f32(points, normals, view_dirs,
                                    feature_vectors, params)

    assert out.shape == (N, D_OUT)
    # Tight check vs. a numerically matched (bf16-operand) reference.
    assert jnp.allclose(out, ref_bf16, atol=1e-4, rtol=1e-4), \
        "mismatch vs bf16-matched reference"
    # Loose sanity check vs. the full-f32 reference (bf16 MXU inputs).
    assert jnp.allclose(out, ref_f32, atol=2e-2), \
        "mismatch vs f32 reference beyond bf16 tolerance"

    print("KERNEL_OK")
</pallas_src>

<mosaic_0001>
module attributes {stable_mosaic.version = 11 : i64} {
  func.func @_rendering_mlp_kernel(%arg0: i32, %arg1: memref<256x3xf32, #tpu.memory_space<vmem>>, %arg2: memref<256x3xf32, #tpu.memory_space<vmem>>, %arg3: memref<256x3xf32, #tpu.memory_space<vmem>>, %arg4: memref<256x32xf32, #tpu.memory_space<vmem>>, %arg5: memref<3x64xbf16, #tpu.memory_space<vmem>>, %arg6: memref<3x64xbf16, #tpu.memory_space<vmem>>, %arg7: memref<3x64xbf16, #tpu.memory_space<vmem>>, %arg8: memref<32x64xbf16, #tpu.memory_space<vmem>>, %arg9: memref<1x64xf32, #tpu.memory_space<vmem>>, %arg10: memref<64x64xbf16, #tpu.memory_space<vmem>>, %arg11: memref<1x64xf32, #tpu.memory_space<vmem>>, %arg12: memref<64x3xbf16, #tpu.memory_space<vmem>>, %arg13: memref<1x3xf32, #tpu.memory_space<vmem>>, %arg14: memref<3x256xf32, #tpu.memory_space<vmem>>) attributes {dimension_semantics = [#tpu.dimension_semantics<parallel>], iteration_bounds = array<i64: 1>, scalar_prefetch = 0 : i64, scratch_operands = 0 : i64, tpu.core_type = #tpu.core_type<tc>, window_params = [{transform_indices = @transform_0, window_bounds = array<i64: 256, 3>}, {transform_indices = @transform_1, window_bounds = array<i64: 256, 3>}, {transform_indices = @transform_2, window_bounds = array<i64: 256, 3>}, {transform_indices = @transform_3, window_bounds = array<i64: 256, 32>}, {pipeline_mode = #tpu.pipeline_mode<synchronous>, transform_indices = @transform_4, window_bounds = array<i64: 3, 64>}, {pipeline_mode = #tpu.pipeline_mode<synchronous>, transform_indices = @transform_5, window_bounds = array<i64: 3, 64>}, {pipeline_mode = #tpu.pipeline_mode<synchronous>, transform_indices = @transform_6, window_bounds = array<i64: 3, 64>}, {pipeline_mode = #tpu.pipeline_mode<synchronous>, transform_indices = @transform_7, window_bounds = array<i64: 32, 64>}, {pipeline_mode = #tpu.pipeline_mode<synchronous>, transform_indices = @transform_8, window_bounds = array<i64: 1, 64>}, {pipeline_mode = #tpu.pipeline_mode<synchronous>, transform_indices = @transform_9, window_bounds = array<i64: 64, 64>}, {pipeline_mode = #tpu.pipeline_mode<synchronous>, transform_indices = @transform_10, window_bounds = array<i64: 1, 64>}, {pipeline_mode = #tpu.pipeline_mode<synchronous>, transform_indices = @transform_11, window_bounds = array<i64: 64, 3>}, {pipeline_mode = #tpu.pipeline_mode<synchronous>, transform_indices = @transform_12, window_bounds = array<i64: 1, 3>}, {transform_indices = @transform_13, window_bounds = array<i64: 3, 256>}]} {
    %c0 = arith.constant 0 : index
    %c0_0 = arith.constant 0 : index
    %0 = vector.load %arg1[%c0, %c0_0] : memref<256x3xf32, #tpu.memory_space<vmem>>, vector<256x3xf32>
    %1 = arith.truncf %0 : vector<256x3xf32> to vector<256x3xbf16>
    %c0_1 = arith.constant 0 : index
    %c0_2 = arith.constant 0 : index
    %2 = vector.load %arg5[%c0_1, %c0_2] : memref<3x64xbf16, #tpu.memory_space<vmem>>, vector<3x64xbf16>
    %cst = arith.constant dense<0.000000e+00> : vector<256x64xf32>
    %3 = tpu.matmul %1, %2, %cst {dimension_numbers = #tpu.dot_dimension_numbers<[1], [0], [0], [1], [0, 0, 1, 1], [], []>} : vector<256x3xbf16>, vector<3x64xbf16>, vector<256x64xf32> -> vector<256x64xf32>
    %c0_3 = arith.constant 0 : index
    %c0_4 = arith.constant 0 : index
    %4 = vector.load %arg2[%c0_3, %c0_4] : memref<256x3xf32, #tpu.memory_space<vmem>>, vector<256x3xf32>
    %5 = arith.truncf %4 : vector<256x3xf32> to vector<256x3xbf16>
    %c0_5 = arith.constant 0 : index
    %c0_6 = arith.constant 0 : index
    %6 = vector.load %arg6[%c0_5, %c0_6] : memref<3x64xbf16, #tpu.memory_space<vmem>>, vector<3x64xbf16>
    %cst_7 = arith.constant dense<0.000000e+00> : vector<256x64xf32>
    %7 = tpu.matmul %5, %6, %cst_7 {dimension_numbers = #tpu.dot_dimension_numbers<[1], [0], [0], [1], [0, 0, 1, 1], [], []>} : vector<256x3xbf16>, vector<3x64xbf16>, vector<256x64xf32> -> vector<256x64xf32>
    %8 = arith.addf %3, %7 : vector<256x64xf32>
    %c0_8 = arith.constant 0 : index
    %c0_9 = arith.constant 0 : index
    %9 = vector.load %arg3[%c0_8, %c0_9] : memref<256x3xf32, #tpu.memory_space<vmem>>, vector<256x3xf32>
    %10 = arith.truncf %9 : vector<256x3xf32> to vector<256x3xbf16>
    %c0_10 = arith.constant 0 : index
    %c0_11 = arith.constant 0 : index
    %11 = vector.load %arg7[%c0_10, %c0_11] : memref<3x64xbf16, #tpu.memory_space<vmem>>, vector<3x64xbf16>
    %cst_12 = arith.constant dense<0.000000e+00> : vector<256x64xf32>
    %12 = tpu.matmul %10, %11, %cst_12 {dimension_numbers = #tpu.dot_dimension_numbers<[1], [0], [0], [1], [0, 0, 1, 1], [], []>} : vector<256x3xbf16>, vector<3x64xbf16>, vector<256x64xf32> -> vector<256x64xf32>
    %13 = arith.addf %8, %12 : vector<256x64xf32>
    %c0_13 = arith.constant 0 : index
    %c0_14 = arith.constant 0 : index
    %14 = vector.load %arg4[%c0_13, %c0_14] : memref<256x32xf32, #tpu.memory_space<vmem>>, vector<256x32xf32>
    %15 = arith.truncf %14 : vector<256x32xf32> to vector<256x32xbf16>
    %c0_15 = arith.constant 0 : index
    %c0_16 = arith.constant 0 : index
    %16 = vector.load %arg8[%c0_15, %c0_16] : memref<32x64xbf16, #tpu.memory_space<vmem>>, vector<32x64xbf16>
    %cst_17 = arith.constant dense<0.000000e+00> : vector<256x64xf32>
    %17 = tpu.matmul %15, %16, %cst_17 {dimension_numbers = #tpu.dot_dimension_numbers<[1], [0], [0], [1], [0, 0, 1, 1], [], []>} : vector<256x32xbf16>, vector<32x64xbf16>, vector<256x64xf32> -> vector<256x64xf32>
    %18 = arith.addf %13, %17 : vector<256x64xf32>
    %c0_18 = arith.constant 0 : index
    %c0_19 = arith.constant 0 : index
    %19 = vector.load %arg9[%c0_18, %c0_19] : memref<1x64xf32, #tpu.memory_space<vmem>>, vector<1x64xf32>
    %20 = vector.broadcast %19 : vector<1x64xf32> to vector<256x64xf32>
    %21 = arith.addf %18, %20 : vector<256x64xf32>
    %cst_20 = arith.constant 0.000000e+00 : f32
    %22 = vector.broadcast %cst_20 : f32 to vector<256x64xf32>
    %23 = arith.maximumf %21, %22 : vector<256x64xf32>
    %24 = arith.truncf %23 : vector<256x64xf32> to vector<256x64xbf16>
    %c0_21 = arith.constant 0 : index
    %c0_22 = arith.constant 0 : index
    %25 = vector.load %arg10[%c0_21, %c0_22] : memref<64x64xbf16, #tpu.memory_space<vmem>>, vector<64x64xbf16>
    %cst_23 = arith.constant dense<0.000000e+00> : vector<256x64xf32>
    %26 = tpu.matmul %24, %25, %cst_23 {dimension_numbers = #tpu.dot_dimension_numbers<[1], [0], [0], [1], [0, 0, 1, 1], [], []>} : vector<256x64xbf16>, vector<64x64xbf16>, vector<256x64xf32> -> vector<256x64xf32>
    %c0_24 = arith.constant 0 : index
    %c0_25 = arith.constant 0 : index
    %27 = vector.load %arg11[%c0_24, %c0_25] : memref<1x64xf32, #tpu.memory_space<vmem>>, vector<1x64xf32>
    %28 = vector.broadcast %27 : vector<1x64xf32> to vector<256x64xf32>
    %29 = arith.addf %26, %28 : vector<256x64xf32>
    %cst_26 = arith.constant 0.000000e+00 : f32
    %30 = vector.broadcast %cst_26 : f32 to vector<256x64xf32>
    %31 = arith.maximumf %29, %30 : vector<256x64xf32>
    %32 = arith.truncf %31 : vector<256x64xf32> to vector<256x64xbf16>
    %c0_27 = arith.constant 0 : index
    %c0_28 = arith.constant 0 : index
    %33 = vector.load %arg12[%c0_27, %c0_28] : memref<64x3xbf16, #tpu.memory_space<vmem>>, vector<64x3xbf16>
    %cst_29 = arith.constant dense<0.000000e+00> : vector<256x3xf32>
    %34 = tpu.matmul %32, %33, %cst_29 {dimension_numbers = #tpu.dot_dimension_numbers<[1], [0], [0], [1], [0, 0, 1, 1], [], []>} : vector<256x64xbf16>, vector<64x3xbf16>, vector<256x3xf32> -> vector<256x3xf32>
    %c0_30 = arith.constant 0 : index
    %c0_31 = arith.constant 0 : index
    %35 = vector.load %arg13[%c0_30, %c0_31] : memref<1x3xf32, #tpu.memory_space<vmem>>, vector<1x3xf32>
    %36 = vector.broadcast %35 : vector<1x3xf32> to vector<256x3xf32>
    %37 = arith.addf %34, %36 : vector<256x3xf32>
    %38 = arith.negf %37 : vector<256x3xf32>
    %39 = math.exp %38 : vector<256x3xf32>
    %cst_32 = arith.constant 1.000000e+00 : f32
    %40 = vector.broadcast %cst_32 : f32 to vector<256x3xf32>
    %41 = arith.addf %40, %39 : vector<256x3xf32>
    %42 = arith.divf %40, %41 : vector<256x3xf32>
    %43 = tpu.transpose %42, [1, 0] : vector<256x3xf32> -> vector<3x256xf32>
    %c0_33 = arith.constant 0 : index
    %c0_34 = arith.constant 0 : index
    %44 = vector.load %arg14[%c0_33, %c0_34] : memref<3x256xf32, #tpu.memory_space<vmem>>, vector<3x256xf32>
    tpu.vector_store %arg14[%c0_33, %c0_34], %43 {strides = array<i32>} : memref<3x256xf32, #tpu.memory_space<vmem>>, vector<3x256xf32>,
    return
  }
  func.func @transform_0(%arg0: i32) -> (i32, i32) {
    %c0_i32 = arith.constant 0 : i32
    %c0_i32_0 = arith.constant 0 : i32
    return %arg0, %c0_i32 : i32, i32
  }
  func.func @transform_1(%arg0: i32) -> (i32, i32) {
    %c0_i32 = arith.constant 0 : i32
    %c0_i32_0 = arith.constant 0 : i32
    return %arg0, %c0_i32 : i32, i32
  }
  func.func @transform_2(%arg0: i32) -> (i32, i32) {
    %c0_i32 = arith.constant 0 : i32
    %c0_i32_0 = arith.constant 0 : i32
    return %arg0, %c0_i32 : i32, i32
  }
  func.func @transform_3(%arg0: i32) -> (i32, i32) {
    %c0_i32 = arith.constant 0 : i32
    %c0_i32_0 = arith.constant 0 : i32
    return %arg0, %c0_i32 : i32, i32
  }
  func.func @transform_4(%arg0: i32) -> (i32, i32) {
    %c0_i32 = arith.constant 0 : i32
    %c0_i32_0 = arith.constant 0 : i32
    %c0_i32_1 = arith.constant 0 : i32
    return %c0_i32, %c0_i32_0 : i32, i32
  }
  func.func @transform_5(%arg0: i32) -> (i32, i32) {
    %c0_i32 = arith.constant 0 : i32
    %c0_i32_0 = arith.constant 0 : i32
    %c0_i32_1 = arith.constant 0 : i32
    return %c0_i32, %c0_i32_0 : i32, i32
  }
  func.func @transform_6(%arg0: i32) -> (i32, i32) {
    %c0_i32 = arith.constant 0 : i32
    %c0_i32_0 = arith.constant 0 : i32
    %c0_i32_1 = arith.constant 0 : i32
    return %c0_i32, %c0_i32_0 : i32, i32
  }
  func.func @transform_7(%arg0: i32) -> (i32, i32) {
    %c0_i32 = arith.constant 0 : i32
    %c0_i32_0 = arith.constant 0 : i32
    %c0_i32_1 = arith.constant 0 : i32
    return %c0_i32, %c0_i32_0 : i32, i32
  }
  func.func @transform_8(%arg0: i32) -> (i32, i32) {
    %c0_i32 = arith.constant 0 : i32
    %c0_i32_0 = arith.constant 0 : i32
    %c0_i32_1 = arith.constant 0 : i32
    return %c0_i32, %c0_i32_0 : i32, i32
  }
  func.func @transform_9(%arg0: i32) -> (i32, i32) {
    %c0_i32 = arith.constant 0 : i32
    %c0_i32_0 = arith.constant 0 : i32
    %c0_i32_1 = arith.constant 0 : i32
    return %c0_i32, %c0_i32_0 : i32, i32
  }
  func.func @transform_10(%arg0: i32) -> (i32, i32) {
    %c0_i32 = arith.constant 0 : i32
    %c0_i32_0 = arith.constant 0 : i32
    %c0_i32_1 = arith.constant 0 : i32
    return %c0_i32, %c0_i32_0 : i32, i32
  }
  func.func @transform_11(%arg0: i32) -> (i32, i32) {
    %c0_i32 = arith.constant 0 : i32
    %c0_i32_0 = arith.constant 0 : i32
    %c0_i32_1 = arith.constant 0 : i32
    return %c0_i32, %c0_i32_0 : i32, i32
  }
  func.func @transform_12(%arg0: i32) -> (i32, i32) {
    %c0_i32 = arith.constant 0 : i32
    %c0_i32_0 = arith.constant 0 : i32
    %c0_i32_1 = arith.constant 0 : i32
    return %c0_i32, %c0_i32_0 : i32, i32
  }
  func.func @transform_13(%arg0: i32) -> (i32, i32) {
    %c0_i32 = arith.constant 0 : i32
    %c0_i32_0 = arith.constant 0 : i32
    return %c0_i32, %arg0 : i32, i32
  }
}

</mosaic_0001>

<bundles_post_ra>
// kernel: tpu_custom_call.1
= control target key start
LH: loop header
LB: loop body
LE: loop exit
PB: predicated region body
PF: predicated region fallthrough
CT: control target
= control target key end

     0   :  { %vm193_vm0 = vcmask 1040384   ;;  %vm194_vm1 = vcmask 1041408   ;;  %v2709_v2 = vmov 65535   ;;  %vm144_vm2 = vcmask 23552   ;;  %s3549_s0 = inlined_call_operand.vmem [shape: f32[256,3], index: 0, kind: input, shape index: {}]   ;;  %s3550_s1 = inlined_call_operand.vmem [shape: f32[256,3], index: 1, kind: input, shape index: {}]   ;;  %s3551_s2 = inlined_call_operand.vmem [shape: f32[256,3], index: 2, kind: input, shape index: {}]   ;;  %s3552_s3 = inlined_call_operand.vmem [shape: f32[256,32], index: 3, kind: input, shape index: {}]   ;;  %s3553_s4 = inlined_call_operand.vmem [shape: bf16[3,64], index: 4, kind: input, shape index: {}]   ;;  %s3554_s5 = inlined_call_operand.vmem [shape: bf16[3,64], index: 5, kind: input, shape index: {}]   ;;  %s3555_s6 = inlined_call_operand.vmem [shape: bf16[3,64], index: 6, kind: input, shape index: {}]   ;;  %s3556_s7 = inlined_call_operand.vmem [shape: bf16[32,64], index: 7, kind: input, shape index: {}]   ;;  %s3557_s8 = inlined_call_operand.vmem [shape: f32[1,64], index: 8, kind: input, shape index: {}]   ;;  %s3558_s9 = inlined_call_operand.vmem [shape: bf16[64,64], index: 9, kind: input, shape index: {}]   ;;  %s3559_s10 = inlined_call_operand.vmem [shape: f32[1,64], index: 10, kind: input, shape index: {}]   ;;  %s3560_s11 = inlined_call_operand.vmem [shape: bf16[64,3], index: 11, kind: input, shape index: {}]   ;;  %s3561_s12 = inlined_call_operand.vmem [shape: f32[1,3], index: 12, kind: input, shape index: {}]   ;;  %s3562_s13 = inlined_call_operand.hbm [shape: f32[3,256], index: 13, kind: output, shape index: {}]  }
   0x1   :  { %v143_v0 = vld [vmem:[%s3554_s5] sm:$0x3]  ;;  %v195_v3 = vsel %vm193_vm0, 4294967295, %v2709_v2  ;;  %v96_v5 = vld [vmem:[%s3550_s1 + $0x8] sm:$0xff]  ;;  %v97_v10 = vld [vmem:[%s3550_s1 + $0x10] sm:$0xff] }
   0x2   :  { %v95_v1 = vld [vmem:[%s3550_s1] sm:$0xff]  ;;  %v196_v7 = vsel %vm194_vm1, %v195_v3, 0  ;;  %v47_v9 = vld [vmem:[%s3549_s0 + $0x8] sm:$0xff]  ;;  %v98_v11 = vld [vmem:[%s3550_s1 + $0x18] sm:$0xff] }
   0x3   :  { %v94_v4 = vld [vmem:[%s3553_s4] sm:$0x3]  ;;  %v127_v8 = vpack.c.bf16 %v96_v5, %v95_v1  ;;  %v198_v12 = vand.u32 %v196_v7, %v143_v0  ;;  %v48_v15 = vld [vmem:[%s3549_s0 + $0x10] sm:$0xff]  ;;  %v49_v16 = vld [vmem:[%s3549_s0 + $0x18] sm:$0xff]  ;;  %v128_v20 = vpack.c.bf16 %v98_v11, %v97_v10 }
   0x4   :  { %v46_v6 = vld [vmem:[%s3549_s0] sm:$0xff]  ;;  %v410_v13 = vand.u32 %v196_v7, %v94_v4  ;;  %v2549_v19 = vld [vmem:[%s3556_s7 + $0x8] sm:$0xff]   ;;  %v79_v21 = vpack.c.bf16 %v49_v16, %v48_v15  ;;  %v101_v28 = vld [vmem:[%s3550_s1 + $0x30] sm:$0xff] }
   0x5   :  { %v78_v14 = vpack.c.bf16 %v47_v9, %v46_v6  ;;  %v621_v17 = vld [vmem:[%s3555_s6] sm:$0x3]  ;;  %2331 = vmatprep.mubr.msk.bf16.mxu0 %vm144_vm2, %v127_v8  ;;  %2329 = vmatprep.subr.bf16.mxu0 %v198_v12  ;;  %v100_v23 = vld [vmem:[%s3550_s1 + $0x28] sm:$0xff]  ;;  %v102_v29 = vld [vmem:[%s3550_s1 + $0x38] sm:$0xff] }
   0x6   :  { %v671_v18 = vand.u32 %v621_v17, %v196_v7  ;;  %2363 = vmatprep.subr.bf16.mxu1 %v410_v13  ;;  %v99_v22 = vld [vmem:[%s3550_s1 + $0x20] sm:$0xff]  ;;  %2330 = vmatpush3.bf16.msra.mxu0 %v198_v12  ;;  %v51_v25 = vld [vmem:[%s3549_s0 + $0x28] sm:$0xff]  ;;  %v52_v30 = vld [vmem:[%s3549_s0 + $0x30] sm:$0xff]  ;;  %v130_v36 = vpack.c.bf16 %v102_v29, %v101_v28 }
   0x7   :  { %v50_v24 = vld [vmem:[%s3549_s0 + $0x20] sm:$0xff]  ;;  %2364 = vmatpush3.bf16.msra.mxu1 %v410_v13  ;;  %2365 = vmatprep.mubr.msk.bf16.mxu1 %vm144_vm2, %v78_v14  ;;  %v129_v26 = vpack.c.bf16 %v100_v23, %v99_v22  ;;  %v53_v31 = vld [vmem:[%s3549_s0 + $0x38] sm:$0xff]  ;;  %v104_v33 = vld [vmem:[%s3550_s1 + $0x48] sm:$0xff] }
   0x8   :  { %2397 = vmatprep.subr.bf16.mxu0 %v671_v18  ;;  %v80_v27 = vpack.c.bf16 %v51_v25, %v50_v24  ;;  %2431 = vmatprep.subr.bf16.mxu1 %v2549_v19  ;;  %v103_v32 = vld [vmem:[%s3550_s1 + $0x40] sm:$0xff]  ;;  %v55_v35 = vld [vmem:[%s3549_s0 + $0x48] sm:$0xff]  ;;  %v81_v37 = vpack.c.bf16 %v53_v31, %v52_v30  ;;  %v105_v41 = vld [vmem:[%s3550_s1 + $0x50] sm:$0xff] }
   0x9   :  { %2332 = vmatmul.mubr.msk.bf16.vlgmr.msra.gmra.mxu0 %vm144_vm2, %v128_v20  ;;  %v54_v34 = vld [vmem:[%s3549_s0 + $0x40] sm:$0xff]  ;;  %v131_v38 = vpack.c.bf16 %v104_v33, %v103_v32  ;;  %v106_v42 = vld [vmem:[%s3550_s1 + $0x58] sm:$0xff]  ;;  %v56_v43 = vld [vmem:[%s3549_s0 + $0x50] sm:$0xff] }
   0xa   :  { %2366 = vmatmul.mubr.msk.bf16.vlgmr.msra.gmra.mxu1 %vm144_vm2, %v79_v21  ;;  %2398 = vmatpush3.bf16.msra.mxu0 %v671_v18  ;;  %v82_v39 = vpack.c.bf16 %v55_v35, %v54_v34  ;;  %v2550_v40 = vld [vmem:[%s3556_s7] sm:$0xff]   ;;  %v57_v44 = vld [vmem:[%s3549_s0 + $0x58] sm:$0xff]  ;;  %v108_v46 = vld [vmem:[%s3550_s1 + $0x68] sm:$0xff]  ;;  %v132_v49 = vpack.c.bf16 %v106_v42, %v105_v41 }
   0xb   :  { %2432 = vmatpush3.bf16.msra.mxu1 %v2549_v19  ;;  %2335 = vmatprep.mubr.msk.bf16.mxu0 %vm144_vm2, %v129_v26  ;;  %v107_v45 = vld [vmem:[%s3550_s1 + $0x60] sm:$0xff]  ;;  %v59_v48 = vld [vmem:[%s3549_s0 + $0x68] sm:$0xff]  ;;  %v83_v50 = vpack.c.bf16 %v57_v44, %v56_v43  ;;  %v109_v53 = vld [vmem:[%s3550_s1 + $0x70] sm:$0xff] }
   0xc   :  { %2369 = vmatprep.mubr.msk.bf16.mxu1 %vm144_vm2, %v80_v27  ;;  %v58_v47 = vld [vmem:[%s3549_s0 + $0x60] sm:$0xff]  ;;  %2433 = vmatprep.subr.bf16.mxu1 %v2550_v40  ;;  %v133_v51 = vpack.c.bf16 %v108_v46, %v107_v45  ;;  %v110_v54 = vld [vmem:[%s3550_s1 + $0x78] sm:$0xff]  ;;  %v60_v55 = vld [vmem:[%s3549_s0 + $0x70] sm:$0xff] }
   0xd   :  { %v84_v52 = vpack.c.bf16 %v59_v48, %v58_v47  ;;  %v61_v56 = vld [vmem:[%s3549_s0 + $0x78] sm:$0xff]  ;;  %v111_v57 = vld [vmem:[%s3550_s1 + $0x80] sm:$0xff]  ;;  %v112_v58 = vld [vmem:[%s3550_s1 + $0x88] sm:$0xff]  ;;  %v134_v61 = vpack.c.bf16 %v110_v54, %v109_v53 }
   0xe   :  { %v62_v59 = vld [vmem:[%s3549_s0 + $0x80] sm:$0xff]  ;;  %v63_v60 = vld [vmem:[%s3549_s0 + $0x88] sm:$0xff]  ;;  %v85_v62 = vpack.c.bf16 %v61_v56, %v60_v55  ;;  %v135_v63 = vpack.c.bf16 %v112_v58, %v111_v57  ;;  %v113_v1 = vld [vmem:[%s3550_s1 + $0x90] sm:$0xff] }
   0xf   :  { %2434 = vmatpush3.bf16.msra.mxu1 %v2550_v40  ;;  %v86_v0 = vpack.c.bf16 %v63_v60, %v62_v59  ;;  %v114_v2 = vld [vmem:[%s3550_s1 + $0x98] sm:$0xff]  ;;  %v64_v3 = vld [vmem:[%s3549_s0 + $0x90] sm:$0xff]  ;;  %v115_v5 = vld [vmem:[%s3550_s1 + $0xa0] sm:$0xff] }
  0x10   :  { %v65_v4 = vld [vmem:[%s3549_s0 + $0x98] sm:$0xff]  ;;  %v116_v6 = vld [vmem:[%s3550_s1 + $0xa8] sm:$0xff]  ;;  %v66_v7 = vld [vmem:[%s3549_s0 + $0xa0] sm:$0xff]  ;;  %v136_v9 = vpack.c.bf16 %v114_v2, %v113_v1 }
  0x11   :  { %2336 = vmatmul.mubr.msk.bf16.gmra.mxu0 %vm144_vm2, %v130_v36  ;;  %v67_v8 = vld [vmem:[%s3549_s0 + $0xa8] sm:$0xff]  ;;  %v87_v10 = vpack.c.bf16 %v65_v4, %v64_v3  ;;  %v137_v11 = vpack.c.bf16 %v116_v6, %v115_v5  ;;  %v117_v13 = vld [vmem:[%s3550_s1 + $0xb0] sm:$0xff]  ;;  %v118_v14 = vld [vmem:[%s3550_s1 + $0xb8] sm:$0xff] }
  0x12   :  { %2370 = vmatmul.mubr.msk.bf16.gmra.mxu1 %vm144_vm2, %v81_v37  ;;  %2339 = vmatprep.mubr.msk.bf16.mxu0 %vm144_vm2, %v131_v38  ;;  %v88_v12 = vpack.c.bf16 %v67_v8, %v66_v7  ;;  %v68_v15 = vld [vmem:[%s3549_s0 + $0xb0] sm:$0xff]  ;;  %v69_v16 = vld [vmem:[%s3549_s0 + $0xb8] sm:$0xff]  ;;  %v119_v17 = vld [vmem:[%s3550_s1 + $0xc0] sm:$0xff]  ;;  %v138_v21 = vpack.c.bf16 %v118_v14, %v117_v13 }
  0x13   :  { %2373 = vmatprep.mubr.msk.bf16.mxu1 %vm144_vm2, %v82_v39  ;;  %v120_v18 = vld [vmem:[%s3550_s1 + $0xc8] sm:$0xff]  ;;  %v70_v19 = vld [vmem:[%s3549_s0 + $0xc0] sm:$0xff]  ;;  %v89_v22 = vpack.c.bf16 %v69_v16, %v68_v15  ;;  %v121_v25 = vld [vmem:[%s3550_s1 + $0xd0] sm:$0xff] }
  0x14   :  { %v71_v20 = vld [vmem:[%s3549_s0 + $0xc8] sm:$0xff]  ;;  %v139_v23 = vpack.c.bf16 %v120_v18, %v119_v17  ;;  %v122_v26 = vld [vmem:[%s3550_s1 + $0xd8] sm:$0xff]  ;;  %v72_v27 = vld [vmem:[%s3549_s0 + $0xd0] sm:$0xff] }
  0x15   :  { %v90_v24 = vpack.c.bf16 %v71_v20, %v70_v19  ;;  %v73_v28 = vld [vmem:[%s3549_s0 + $0xd8] sm:$0xff]  ;;  %v123_v29 = vld [vmem:[%s3550_s1 + $0xe0] sm:$0xff]  ;;  %v124_v30 = vld [vmem:[%s3550_s1 + $0xe8] sm:$0xff] }
  0x16   :  { %v74_v31 = vld [vmem:[%s3549_s0 + $0xe0] sm:$0xff]  ;;  %v75_v32 = vld [vmem:[%s3549_s0 + $0xe8] sm:$0xff] }
  0x19   :  { %2340 = vmatmul.mubr.msk.bf16.gmra.mxu0 %vm144_vm2, %v132_v49 }
  0x1a   :  { %2374 = vmatmul.mubr.msk.bf16.gmra.mxu1 %vm144_vm2, %v83_v50  ;;  %2343 = vmatprep.mubr.msk.bf16.mxu0 %vm144_vm2, %v133_v51 }
  0x1b   :  { %2377 = vmatprep.mubr.msk.bf16.mxu1 %vm144_vm2, %v84_v52 }
  0x21   :  { %2344 = vmatmul.mubr.msk.bf16.gmra.mxu0 %vm144_vm2, %v134_v61 }
  0x22   :  { %2378 = vmatmul.mubr.msk.bf16.gmra.mxu1 %vm144_vm2, %v85_v62  ;;  %2347 = vmatprep.mubr.msk.bf16.mxu0 %vm144_vm2, %v135_v63 }
  0x23   :  { %2381 = vmatprep.mubr.msk.bf16.mxu1 %vm144_vm2, %v86_v0 }
  0x29   :  { %2348 = vmatmul.mubr.msk.bf16.gmra.mxu0 %vm144_vm2, %v136_v9 }
  0x2a   :  { %2382 = vmatmul.mubr.msk.bf16.gmra.mxu1 %vm144_vm2, %v87_v10  ;;  %2351 = vmatprep.mubr.msk.bf16.mxu0 %vm144_vm2, %v137_v11 }
  0x2b   :  { %2385 = vmatprep.mubr.msk.bf16.mxu1 %vm144_vm2, %v88_v12 }
  0x31   :  { %2352 = vmatmul.mubr.msk.bf16.gmra.mxu0 %vm144_vm2, %v138_v21 }
  0x32   :  { %2386 = vmatmul.mubr.msk.bf16.gmra.mxu1 %vm144_vm2, %v89_v22  ;;  %2355 = vmatprep.mubr.msk.bf16.mxu0 %vm144_vm2, %v139_v23 }
  0x33   :  { %2389 = vmatprep.mubr.msk.bf16.mxu1 %vm144_vm2, %v90_v24 }
  0x34   :  { %18 = vsyncpa [#allocation3], 0  ;;  %v140_v33 = vpack.c.bf16 %v122_v26, %v121_v25  ;;  %v91_v34 = vpack.c.bf16 %v73_v28, %v72_v27  ;;  %v141_v35 = vpack.c.bf16 %v124_v30, %v123_v29  ;;  %v92_v36 = vpack.c.bf16 %v75_v32, %v74_v31  ;;  %v125_v37 = vld [vmem:[%s3550_s1 + $0xf0] sm:$0xff]  ;;  %v126_v38 = vld [vmem:[%s3550_s1 + $0xf8] sm:$0xff] }
  0x35   :  { %v76_v39 = vld [vmem:[%s3549_s0 + $0xf0] sm:$0xff]  ;;  %v77_v40 = vld [vmem:[%s3549_s0 + $0xf8] sm:$0xff]  ;;  %v573_v41 = vld [vmem:[%s3551_s2] sm:$0xff]  ;;  %v142_v45 = vpack.c.bf16 %v126_v38, %v125_v37  ;;  %vm930_vm3 = vcmask 261120   ;;  %vm1298_vm4 = vcmask 523264  }
  0x36   :  { %v574_v42 = vld [vmem:[%s3551_s2 + $0x8] sm:$0xff]  ;;  %v866_v43 = vld [vmem:[%s3552_s3] sm:$0xff]  ;;  %v93_v46 = vpack.c.bf16 %v77_v40, %v76_v39  ;;  %v575_v49 = vld [vmem:[%s3551_s2 + $0x10] sm:$0xff] }
  0x37   :  { %v867_v44 = vld [vmem:[%s3552_s3 + $0x8] sm:$0xff]  ;;  %v605_v47 = vpack.c.bf16 %v574_v42, %v573_v41  ;;  %v576_v50 = vld [vmem:[%s3551_s2 + $0x18] sm:$0xff]  ;;  %v868_v51 = vld [vmem:[%s3552_s3 + $0x10] sm:$0xff] }
  0x38   :  { %v898_v48 = vpack.c.bf16 %v867_v44, %v866_v43  ;;  %v869_v52 = vld [vmem:[%s3552_s3 + $0x18] sm:$0xff]  ;;  %v577_v53 = vld [vmem:[%s3551_s2 + $0x20] sm:$0xff]  ;;  %v578_v54 = vld [vmem:[%s3551_s2 + $0x28] sm:$0xff]  ;;  %v606_v57 = vpack.c.bf16 %v576_v50, %v575_v49 }
  0x39   :  { %2356 = vmatmul.mubr.msk.bf16.gmra.mxu0 %vm144_vm2, %v140_v33  ;;  %v870_v55 = vld [vmem:[%s3552_s3 + $0x20] sm:$0xff]  ;;  %v871_v56 = vld [vmem:[%s3552_s3 + $0x28] sm:$0xff]  ;;  %v899_v58 = vpack.c.bf16 %v869_v52, %v868_v51  ;;  %v607_v59 = vpack.c.bf16 %v578_v54, %v577_v53  ;;  %v579_v61 = vld [vmem:[%s3551_s2 + $0x30] sm:$0xff] }
  0x3a   :  { %2390 = vmatmul.mubr.msk.bf16.gmra.mxu1 %vm144_vm2, %v91_v34  ;;  %2359 = vmatprep.mubr.msk.bf16.mxu0 %vm144_vm2, %v141_v35  ;;  %v900_v60 = vpack.c.bf16 %v871_v56, %v870_v55  ;;  %v580_v62 = vld [vmem:[%s3551_s2 + $0x38] sm:$0xff]  ;;  %v872_v63 = vld [vmem:[%s3552_s3 + $0x30] sm:$0xff]  ;;  %v581_v1 = vld [vmem:[%s3551_s2 + $0x40] sm:$0xff] }
  0x3b   :  { %2393 = vmatprep.mubr.msk.bf16.mxu1 %vm144_vm2, %v92_v36  ;;  %v873_v0 = vld [vmem:[%s3552_s3 + $0x38] sm:$0xff]  ;;  %v582_v2 = vld [vmem:[%s3551_s2 + $0x48] sm:$0xff]  ;;  %v874_v3 = vld [vmem:[%s3552_s3 + $0x40] sm:$0xff]  ;;  %v608_v5 = vpack.c.bf16 %v580_v62, %v579_v61 }
  0x3c   :  { %v875_v4 = vld [vmem:[%s3552_s3 + $0x48] sm:$0xff]  ;;  %v901_v6 = vpack.c.bf16 %v873_v0, %v872_v63  ;;  %v609_v7 = vpack.c.bf16 %v582_v2, %v581_v1  ;;  %v583_v9 = vld [vmem:[%s3551_s2 + $0x50] sm:$0xff]  ;;  %v584_v10 = vld [vmem:[%s3551_s2 + $0x58] sm:$0xff] }
  0x3d   :  { %v902_v8 = vpack.c.bf16 %v875_v4, %v874_v3  ;;  %v876_v11 = vld [vmem:[%s3552_s3 + $0x50] sm:$0xff]  ;;  %v877_v12 = vld [vmem:[%s3552_s3 + $0x58] sm:$0xff]  ;;  %v585_v13 = vld [vmem:[%s3551_s2 + $0x60] sm:$0xff]  ;;  %v610_v17 = vpack.c.bf16 %v584_v10, %v583_v9 }
  0x3e   :  { %v586_v14 = vld [vmem:[%s3551_s2 + $0x68] sm:$0xff]  ;;  %v878_v15 = vld [vmem:[%s3552_s3 + $0x60] sm:$0xff]  ;;  %v903_v18 = vpack.c.bf16 %v877_v12, %v876_v11  ;;  %v587_v21 = vld [vmem:[%s3551_s2 + $0x70] sm:$0xff] }
  0x3f   :  { %v879_v16 = vld [vmem:[%s3552_s3 + $0x68] sm:$0xff]  ;;  %v611_v19 = vpack.c.bf16 %v586_v14, %v585_v13  ;;  %v588_v22 = vld [vmem:[%s3551_s2 + $0x78] sm:$0xff]  ;;  %v880_v23 = vld [vmem:[%s3552_s3 + $0x70] sm:$0xff] }
  0x40   :  { %v904_v20 = vpack.c.bf16 %v879_v16, %v878_v15  ;;  %v881_v24 = vld [vmem:[%s3552_s3 + $0x78] sm:$0xff]  ;;  %v589_v25 = vld [vmem:[%s3551_s2 + $0x80] sm:$0xff]  ;;  %v590_v26 = vld [vmem:[%s3551_s2 + $0x88] sm:$0xff]  ;;  %v612_v30 = vpack.c.bf16 %v588_v22, %v587_v21 }
  0x41   :  { %2360 = vmatmul.mubr.msk.bf16.gmra.mxu0 %vm144_vm2, %v142_v45  ;;  %v882_v27 = vld [vmem:[%s3552_s3 + $0x80] sm:$0xff]  ;;  %v883_v28 = vld [vmem:[%s3552_s3 + $0x88] sm:$0xff]  ;;  %v2551_v29 = vld [vmem:[%s3558_s9 + $0x18] sm:$0xff]   ;;  %v905_v31 = vpack.c.bf16 %v881_v24, %v880_v23  ;;  %v613_v32 = vpack.c.bf16 %v590_v26, %v589_v25 }
  0x42   :  { %2394 = vmatmul.mubr.msk.bf16.gmra.mxu1 %vm144_vm2, %v93_v46  ;;  %2399 = vmatprep.mubr.msk.bf16.mxu0 %vm144_vm2, %v605_v47  ;;  %v906_v33 = vpack.c.bf16 %v883_v28, %v882_v27  ;;  %v591_v34 = vld [vmem:[%s3551_s2 + $0x90] sm:$0xff]  ;;  %v592_v35 = vld [vmem:[%s3551_s2 + $0x98] sm:$0xff]  ;;  %v593_v38 = vld [vmem:[%s3551_s2 + $0xa0] sm:$0xff] }
  0x43   :  { %2435 = vmatprep.mubr.msk.bf16.mxu1 %vm930_vm3, %v898_v48  ;;  %2467 = vmatprep.subr.bf16.mxu0 %v2551_v29  ;;  %v884_v36 = vld [vmem:[%s3552_s3 + $0x90] sm:$0xff]  ;;  %v885_v37 = vld [vmem:[%s3552_s3 + $0x98] sm:$0xff]  ;;  %v594_v39 = vld [vmem:[%s3551_s2 + $0xa8] sm:$0xff]  ;;  %v614_v42 = vpack.c.bf16 %v592_v35, %v591_v34 }
  0x44   :  { %v886_v40 = vld [vmem:[%s3552_s3 + $0xa0] sm:$0xff]  ;;  %v887_v41 = vld [vmem:[%s3552_s3 + $0xa8] sm:$0xff]  ;;  %v907_v43 = vpack.c.bf16 %v885_v37, %v884_v36  ;;  %v615_v44 = vpack.c.bf16 %v594_v39, %v593_v38  ;;  %v595_v46 = vld [vmem:[%s3551_s2 + $0xb0] sm:$0xff] }
  0x45   :  { %v908_v45 = vpack.c.bf16 %v887_v41, %v886_v40  ;;  %v596_v47 = vld [vmem:[%s3551_s2 + $0xb8] sm:$0xff]  ;;  %v888_v48 = vld [vmem:[%s3552_s3 + $0xb0] sm:$0xff]  ;;  %v597_v50 = vld [vmem:[%s3551_s2 + $0xc0] sm:$0xff] }
  0x46   :  { %v889_v49 = vld [vmem:[%s3552_s3 + $0xb8] sm:$0xff]  ;;  %v598_v51 = vld [vmem:[%s3551_s2 + $0xc8] sm:$0xff]  ;;  %v890_v52 = vld [vmem:[%s3552_s3 + $0xc0] sm:$0xff]  ;;  %v616_v55 = vpack.c.bf16 %v596_v47, %v595_v46 }
  0x47   :  { %v891_v53 = vld [vmem:[%s3552_s3 + $0xc8] sm:$0xff]  ;;  %v2552_v54 = vld [vmem:[%s3558_s9 + $0x10] sm:$0xff]   ;;  %v909_v56 = vpack.c.bf16 %v889_v49, %v888_v48  ;;  %v893_v62 = vld [vmem:[%s3552_s3 + $0xd8] sm:$0xff] }
  0x48   :  { %v892_v61 = vld [vmem:[%s3552_s3 + $0xd0] sm:$0xff]  ;;  %v601_v63 = vld [vmem:[%s3551_s2 + $0xe0] sm:$0xff]  ;;  %v602_v0 = vld [vmem:[%s3551_s2 + $0xe8] sm:$0xff] }
  0x49   :  { %2400 = vmatmul.mubr.msk.bf16.vlgmr.msra.gmra.mxu0 %vm144_vm2, %v606_v57  ;;  %v617_v57 = vpack.c.bf16 %v598_v51, %v597_v50  ;;  %v894_v1 = vld [vmem:[%s3552_s3 + $0xe0] sm:$0xff]  ;;  %v895_v2 = vld [vmem:[%s3552_s3 + $0xe8] sm:$0xff]  ;;  %v911_v4 = vpack.c.bf16 %v893_v62, %v892_v61  ;;  %v896_v9 = vld [vmem:[%s3552_s3 + $0xf0] sm:$0xff] }
  0x4a   :  { %2436 = vmatmul.mubr.msk.bf16.vlgmr.msra.gmra.mxu1 %vm930_vm3, %v899_v58  ;;  %2403 = vmatprep.mubr.msk.bf16.mxu0 %vm144_vm2, %v607_v59  ;;  %v910_v58 = vpack.c.bf16 %v891_v53, %v890_v52  ;;  %v599_v59 = vld [vmem:[%s3551_s2 + $0xd0] sm:$0xff]  ;;  %v897_v10 = vld [vmem:[%s3552_s3 + $0xf8] sm:$0xff]  ;;  %v2553_v11 = vld [vmem:[%s3558_s9 + $0x8] sm:$0xff]  }
  0x4b   :  { %2439 = vmatprep.mubr.msk.bf16.mxu1 %vm930_vm3, %v900_v60  ;;  %2468 = vmatpush3.bf16.msra.mxu0 %v2551_v29  ;;  %v600_v60 = vld [vmem:[%s3551_s2 + $0xd8] sm:$0xff]  ;;  %v913_v13 = vpack.c.bf16 %v897_v10, %v896_v9  ;;  %v2554_v14 = vld [vmem:[%s3558_s9] sm:$0xff]   ;;  %v2557_v37 = vld [vmem:[%s3560_s11 + $0x8] sm:$0xff]  }
  0x4c   :  { %2469 = vmatprep.subr.bf16.mxu0 %v2552_v54  ;;  %v618_v3 = vpack.c.bf16 %v600_v60, %v599_v59 }
  0x4f   :  { %2470 = vmatpush3.bf16.msra.mxu0 %v2552_v54 }
  0x50   :  { %2471 = vmatprep.subr.bf16.mxu0 %v2553_v11 }
  0x51   :  { %2404 = vmatmul.mubr.msk.bf16.gmra.mxu0 %vm144_vm2, %v608_v5  ;;  %v619_v5 = vpack.c.bf16 %v602_v0, %v601_v63 }
  0x52   :  { %2440 = vmatmul.mubr.msk.bf16.gmra.mxu1 %vm930_vm3, %v901_v6  ;;  %2407 = vmatprep.mubr.msk.bf16.mxu0 %vm144_vm2, %v609_v7  ;;  %v912_v6 = vpack.c.bf16 %v895_v2, %v894_v1  ;;  %v603_v7 = vld [vmem:[%s3551_s2 + $0xf0] sm:$0xff] }
  0x53   :  { %2443 = vmatprep.mubr.msk.bf16.mxu1 %vm930_vm3, %v902_v8  ;;  %v604_v8 = vld [vmem:[%s3551_s2 + $0xf8] sm:$0xff]  ;;  %2472 = vmatpush3.bf16.msra.mxu0 %v2553_v11 }
  0x54   :  { %v620_v12 = vpack.c.bf16 %v604_v8, %v603_v7  ;;  %2473 = vmatprep.subr.bf16.mxu0 %v2554_v14 }
  0x57   :  { %2474 = vmatpush3.bf16.msra.mxu0 %v2554_v14 }
  0x59   :  { %2408 = vmatmul.mubr.msk.bf16.gmra.mxu0 %vm144_vm2, %v610_v17 }
  0x5a   :  { %2444 = vmatmul.mubr.msk.bf16.gmra.mxu1 %vm930_vm3, %v903_v18  ;;  %2411 = vmatprep.mubr.msk.bf16.mxu0 %vm144_vm2, %v611_v19 }
  0x5b   :  { %2447 = vmatprep.mubr.msk.bf16.mxu1 %vm930_vm3, %v904_v20 }
  0x61   :  { %2412 = vmatmul.mubr.msk.bf16.gmra.mxu0 %vm144_vm2, %v612_v30 }
  0x62   :  { %2448 = vmatmul.mubr.msk.bf16.gmra.mxu1 %vm930_vm3, %v905_v31  ;;  %2415 = vmatprep.mubr.msk.bf16.mxu0 %vm144_vm2, %v613_v32  ;;  %v2555_v31 = vld [vmem:[%s3560_s11 + $0x18] sm:$0xff]   ;;  %v2556_v32 = vld [vmem:[%s3560_s11 + $0x10] sm:$0xff]  }
  0x63   :  { %2451 = vmatprep.mubr.msk.bf16.mxu1 %vm930_vm3, %v906_v33  ;;  %2507 = vmatprep.subr.bf16.mxu1 %v2555_v31 }
  0x64   :  { %2508 = vmatpush3.bf16.msra.mxu1 %v2555_v31 }
  0x65   :  { %2509 = vmatprep.subr.bf16.mxu1 %v2556_v32 }
  0x68   :  { %2510 = vmatpush3.bf16.msra.mxu1 %v2556_v32 }
  0x69   :  { %2416 = vmatmul.mubr.msk.bf16.gmra.mxu0 %vm144_vm2, %v614_v42  ;;  %2511 = vmatprep.subr.bf16.mxu1 %v2557_v37 }
  0x6a   :  { %2452 = vmatmul.mubr.msk.bf16.gmra.mxu1 %vm930_vm3, %v907_v43  ;;  %2419 = vmatprep.mubr.msk.bf16.mxu0 %vm144_vm2, %v615_v44  ;;  %v2558_v44 = vld [vmem:[%s3560_s11] sm:$0xff]  }
  0x6b   :  { %2455 = vmatprep.mubr.msk.bf16.mxu1 %vm930_vm3, %v908_v45 }
  0x6c   :  { %2512 = vmatpush3.bf16.msra.mxu1 %v2557_v37 }
  0x6d   :  { %2513 = vmatprep.subr.bf16.mxu1 %v2558_v44 }
  0x70   :  { %2514 = vmatpush3.bf16.msra.mxu1 %v2558_v44 }
  0x71   :  { %2420 = vmatmul.mubr.msk.bf16.gmra.mxu0 %vm144_vm2, %v616_v55 }
  0x72   :  { %2456 = vmatmul.mubr.msk.bf16.gmra.mxu1 %vm930_vm3, %v909_v56  ;;  %2423 = vmatprep.mubr.msk.bf16.mxu0 %vm144_vm2, %v617_v57 }
  0x73   :  { %2459 = vmatprep.mubr.msk.bf16.mxu1 %vm930_vm3, %v910_v58 }
  0x79   :  { %2424 = vmatmul.mubr.msk.bf16.gmra.mxu0 %vm144_vm2, %v618_v3 }
  0x7a   :  { %2460 = vmatmul.mubr.msk.bf16.gmra.mxu1 %vm930_vm3, %v911_v4  ;;  %2427 = vmatprep.mubr.msk.bf16.mxu0 %vm144_vm2, %v619_v5 }
  0x7b   :  { %2463 = vmatprep.mubr.msk.bf16.mxu1 %vm930_vm3, %v912_v6 }
  0x81   :  { %2428 = vmatmul.mubr.msk.bf16.gmra.mxu0 %vm144_vm2, %v620_v12 }
  0x82   :  { %2464 = vmatmul.mubr.msk.bf16.gmra.mxu1 %vm930_vm3, %v913_v13 }
  0xc9   :  { %v2333_v15 = vpop.f32.mrf.mxu0 }
  0xca   :  { %v2367_v16 = vpop.f32.mrf.mxu1 }
  0xcb   :  { %v3256_v17 = vadd.f32 %v2367_v16, %v2333_v15  ;;  %v234_v18 = vpop.f32.mrf.mxu0 }
  0xcc   :  { %v446_v19 = vpop.f32.mrf.mxu1 }
  0xcd   :  { %v3258_v20 = vadd.f32 %v446_v19, %v234_v18  ;;  %v3260_v21 = vpop.f32.mrf.mxu0 }
  0xce   :  { %v3262_v22 = vpop.f32.mrf.mxu1 }
  0xcf   :  { %v3264_v23 = vpop.f32.mrf.mxu0 }
  0xd0   :  { %v3266_v24 = vpop.f32.mrf.mxu1 }
  0xd1   :  { %v2337_v25 = vpop.f32.mrf.mxu0 }
  0xd2   :  { %v2371_v26 = vpop.f32.mrf.mxu1 }
  0xd3   :  { %v3268_v27 = vadd.f32 %v2371_v26, %v2337_v25  ;;  %v250_v28 = vpop.f32.mrf.mxu0 }
  0xd4   :  { %v462_v29 = vpop.f32.mrf.mxu1 }
  0xd5   :  { %v3270_v30 = vadd.f32 %v462_v29, %v250_v28  ;;  %v3278_v33 = vpop.f32.mrf.mxu0 }
  0xd6   :  { %v3280_v34 = vpop.f32.mrf.mxu1 }
  0xd7   :  { %v3282_v35 = vpop.f32.mrf.mxu0 }
  0xd8   :  { %v3284_v36 = vpop.f32.mrf.mxu1 }
  0xd9   :  { %v2341_v38 = vpop.f32.mrf.mxu0 }
  0xda   :  { %v2375_v39 = vpop.f32.mrf.mxu1 }
  0xdb   :  { %v3289_v40 = vadd.f32 %v2375_v39, %v2341_v38  ;;  %v266_v41 = vpop.f32.mrf.mxu0 }
  0xdc   :  { %v478_v42 = vpop.f32.mrf.mxu1 }
  0xdd   :  { %v3291_v43 = vadd.f32 %v478_v42, %v266_v41  ;;  %v2342_v45 = vpop.f32.mrf.mxu0 }
  0xde   :  { %v2376_v46 = vpop.f32.mrf.mxu1 }
  0xdf   :  { %v3296_v47 = vadd.f32 %v2376_v46, %v2342_v45  ;;  %v3298_v48 = vpop.f32.mrf.mxu0 }
  0xe0   :  { %v3300_v49 = vpop.f32.mrf.mxu1 }
  0xe1   :  { %v2345_v50 = vpop.f32.mrf.mxu0 }
  0xe2   :  { %v2379_v51 = vpop.f32.mrf.mxu1 }
  0xe3   :  { %v3302_v52 = vadd.f32 %v2379_v51, %v2345_v50  ;;  %v282_v53 = vpop.f32.mrf.mxu0 }
  0xe4   :  { %v494_v54 = vpop.f32.mrf.mxu1 }
  0xe5   :  { %v3304_v55 = vadd.f32 %v494_v54, %v282_v53  ;;  %v2346_v56 = vpop.f32.mrf.mxu0 }
  0xe6   :  { %v2380_v57 = vpop.f32.mrf.mxu1 }
  0xe7   :  { %v3306_v58 = vadd.f32 %v2380_v57, %v2346_v56  ;;  %v3308_v59 = vpop.f32.mrf.mxu0 }
  0xe8   :  { %v3310_v60 = vpop.f32.mrf.mxu1 }
  0xe9   :  { %v2349_v61 = vpop.f32.mrf.mxu0 }
  0xea   :  { %v2383_v62 = vpop.f32.mrf.mxu1 }
  0xeb   :  { %v3312_v63 = vadd.f32 %v2383_v62, %v2349_v61  ;;  %v298_v0 = vpop.f32.mrf.mxu0 }
  0xec   :  { %v510_v1 = vpop.f32.mrf.mxu1 }
  0xed   :  { %v3314_v2 = vadd.f32 %v510_v1, %v298_v0  ;;  %v2350_v3 = vpop.f32.mrf.mxu0 }
  0xee   :  { %v2384_v4 = vpop.f32.mrf.mxu1 }
  0xef   :  { %v3316_v5 = vadd.f32 %v2384_v4, %v2350_v3  ;;  %v3318_v6 = vpop.f32.mrf.mxu0 }
  0xf0   :  { %v3320_v7 = vpop.f32.mrf.mxu1 }
  0xf1   :  { %v2353_v8 = vpop.f32.mrf.mxu0 }
  0xf2   :  { %v2387_v9 = vpop.f32.mrf.mxu1 }
  0xf3   :  { %v3322_v10 = vadd.f32 %v2387_v9, %v2353_v8  ;;  %v314_v11 = vpop.f32.mrf.mxu0  ;;  %v458_v9 = vadd.f32 %v3262_v22, %v3260_v21 }
  0xf4   :  { %v526_v12 = vpop.f32.mrf.mxu1 }
  0xf5   :  { %v3324_v13 = vadd.f32 %v526_v12, %v314_v11  ;;  %v2354_v14 = vpop.f32.mrf.mxu0 }
  0xf6   :  { %v2388_v15 = vpop.f32.mrf.mxu1 }
  0xf7   :  { %v3326_v16 = vadd.f32 %v2388_v15, %v2354_v14  ;;  %v3328_v18 = vpop.f32.mrf.mxu0  ;;  %v3359_v14 = vld [vmem:[%s3557_s8] ss:$0 sm:$0xff] }
  0xf8   :  { %v3330_v19 = vpop.f32.mrf.mxu1 }
  0xf9   :  { %v2357_v25 = vpop.f32.mrf.mxu0 }
  0xfa   :  { %v2391_v26 = vpop.f32.mrf.mxu1 }
  0xfb   :  { %v3332_v28 = vadd.f32 %v2391_v26, %v2357_v25  ;;  %v330_v29 = vpop.f32.mrf.mxu0  ;;  %v450_v26 = vadd.f32 %v3266_v24, %v3264_v23 }
  0xfc   :  { %v542_v31 = vpop.f32.mrf.mxu1 }
  0xfd   :  { %v3334_v32 = vadd.f32 %v542_v31, %v330_v29  ;;  %v2358_v37 = vpop.f32.mrf.mxu0 }
  0xfe   :  { %v2392_v38 = vpop.f32.mrf.mxu1 }
  0xff   :  { %v3336_v39 = vadd.f32 %v2392_v38, %v2358_v37  ;;  %v3338_v41 = vpop.f32.mrf.mxu0 }
 0x100   :  { %v3340_v42 = vpop.f32.mrf.mxu1 }
 0x101   :  { %v2361_v44 = vpop.f32.mrf.mxu0 }
 0x102   :  { %v2395_v45 = vpop.f32.mrf.mxu1 }
 0x103   :  { %v3342_v46 = vadd.f32 %v2395_v45, %v2361_v44  ;;  %v346_v50 = vpop.f32.mrf.mxu0 }
 0x104   :  { %v558_v51 = vpop.f32.mrf.mxu1 }
 0x105   :  { %v3344_v53 = vadd.f32 %v558_v51, %v346_v50  ;;  %v2362_v54 = vpop.f32.mrf.mxu0 }
 0x106   :  { %v2396_v56 = vpop.f32.mrf.mxu1 }
 0x107   :  { %v3346_v57 = vadd.f32 %v2396_v56, %v2362_v54  ;;  %v3348_v61 = vpop.f32.mrf.mxu0 }
 0x108   :  { %v3350_v62 = vpop.f32.mrf.mxu1 }
 0x109   :  { %v2401_v0 = vpop.f32.mrf.mxu0 }
 0x10a   :  { %v2437_v1 = vpop.f32.mrf.mxu1  ;;  %v836_v3 = vadd.f32 %v2401_v0, %v3256_v17 }
 0x10b   :  { %v707_v4 = vpop.f32.mrf.mxu0 }
 0x10c   :  { %v1013_v8 = vpop.f32.mrf.mxu1  ;;  %v1142_v11 = vadd.f32 %v2437_v1, %v836_v3  ;;  %v834_v12 = vadd.f32 %v707_v4, %v3258_v20  ;;  %v474_v4 = vadd.f32 %v3280_v34, %v3278_v33 }
 0x10d   :  { %v2402_v15 = vpop.f32.mrf.mxu0 }
 0x10e   :  { %v2438_v25 = vpop.f32.mrf.mxu1  ;;  %v1140_v29 = vadd.f32 %v1013_v8, %v834_v12  ;;  %v837_v17 = vadd.f32 %v2402_v15, %v458_v9  ;;  %v1181_v38 = vadd.f32 %v3359_v14, %v1142_v11  ;;  %v466_v8 = vadd.f32 %v3284_v36, %v3282_v35 }
 0x10f   :  { %v710_v31 = vpop.f32.mrf.mxu0 }
 0x110   :  { %v1016_v37 = vpop.f32.mrf.mxu1  ;;  %v1143_v21 = vadd.f32 %v2438_v25, %v837_v17  ;;  %v835_v22 = vadd.f32 %v710_v31, %v450_v26  ;;  %v1179_v45 = vadd.f32 %v3359_v14, %v1140_v29  ;;  %v1213_v23 = vmax.f32 %v1181_v38, 0.0 }
 0x111   :  { %v2405_v44 = vpop.f32.mrf.mxu0 }
 0x112   :  { %v2441_v20 = vpop.f32.mrf.mxu1  ;;  %v1182_v50 = vadd.f32 %v3359_v14, %v1143_v21  ;;  %v1141_v51 = vadd.f32 %v1016_v37, %v835_v22  ;;  %v840_v54 = vadd.f32 %v2405_v44, %v3268_v27  ;;  %v1211_v15 = vmax.f32 %v1179_v45, 0.0 }
 0x113   :  { %v723_v56 = vpop.f32.mrf.mxu0 }
 0x114   :  { %v1029_v0 = vpop.f32.mrf.mxu1  ;;  %v1214_v24 = vmax.f32 %v1182_v50, 0.0  ;;  %v1180_v1 = vadd.f32 %v3359_v14, %v1141_v51  ;;  %v838_v3 = vadd.f32 %v723_v56, %v3270_v30  ;;  %v1146_v9 = vadd.f32 %v2441_v20, %v840_v54 }
 0x115   :  { %v2406_v11 = vpop.f32.mrf.mxu0 }
 0x116   :  { %v2442_v12 = vpop.f32.mrf.mxu1  ;;  %v1244_v25 = vpack.c.bf16 %v1214_v24, %v1213_v23  ;;  %v1212_v27 = vmax.f32 %v1180_v1, 0.0  ;;  %v1144_v26 = vadd.f32 %v1029_v0, %v838_v3  ;;  %v841_v29 = vadd.f32 %v2406_v11, %v474_v4 }
 0x117   :  { %v726_v17 = vpop.f32.mrf.mxu0  ;;  %v1185_v30 = vadd.f32 %v3359_v14, %v1146_v9  ;;  %v482_v4 = vadd.f32 %v3300_v49, %v3298_v48 }
 0x118   :  { %v1032_v31 = vpop.f32.mrf.mxu1  ;;  %v1243_v37 = vpack.c.bf16 %v1212_v27, %v1211_v15  ;;  %v839_v38 = vadd.f32 %v726_v17, %v466_v8  ;;  %v1147_v21 = vadd.f32 %v2442_v12, %v841_v29  ;;  %v1183_v35 = vadd.f32 %v3359_v14, %v1144_v26 }
 0x119   :  { %v2409_v33 = vpop.f32.mrf.mxu0  ;;  %v1217_v56 = vmax.f32 %v1185_v30, 0.0 }
 0x11a   :  { %v2445_v34 = vpop.f32.mrf.mxu1  ;;  %v1145_v36 = vadd.f32 %v1032_v31, %v839_v38  ;;  %v844_v22 = vadd.f32 %v2409_v33, %v3289_v40  ;;  %2475 = vmatprep.mubr.msk.bf16.mxu0 %vm1298_vm4, %v1243_v37  ;;  %v1186_v44 = vadd.f32 %v3359_v14, %v1147_v21  ;;  %v1215_v1 = vmax.f32 %v1183_v35, 0.0 }
 0x11b   :  { %v739_v20 = vpop.f32.mrf.mxu0  ;;  %2476 = vmatmul.mubr.msk.bf16.vlgmr.msra.gmra.mxu0 %vm1298_vm4, %v1244_v25 }
 0x11c   :  { %v1045_v45 = vpop.f32.mrf.mxu1  ;;  %v1184_v50 = vadd.f32 %v3359_v14, %v1145_v36  ;;  %v1150_v51 = vadd.f32 %v2445_v34, %v844_v22  ;;  %v842_v54 = vadd.f32 %v739_v20, %v3291_v43  ;;  %v1218_v0 = vmax.f32 %v1186_v44, 0.0 }
 0x11d   :  { %v2410_v23 = vpop.f32.mrf.mxu0 }
 0x11e   :  { %v2446_v24 = vpop.f32.mrf.mxu1  ;;  %v1216_v3 = vmax.f32 %v1184_v50, 0.0  ;;  %v845_v40 = vadd.f32 %v2410_v23, %v3296_v47  ;;  %v1246_v8 = vpack.c.bf16 %v1218_v0, %v1217_v56  ;;  %v1148_v9 = vadd.f32 %v1045_v45, %v842_v54 }
 0x11f   :  { %v742_v11 = vpop.f32.mrf.mxu0  ;;  %v1189_v25 = vadd.f32 %v3359_v14, %v1150_v51 }
 0x120   :  { %v1048_v12 = vpop.f32.mrf.mxu1  ;;  %v1245_v15 = vpack.c.bf16 %v1216_v3, %v1215_v1  ;;  %v1151_v27 = vadd.f32 %v2446_v24, %v845_v40  ;;  %v843_v43 = vadd.f32 %v742_v11, %v482_v4  ;;  %v1187_v47 = vadd.f32 %v3359_v14, %v1148_v9 }
 0x121   :  { %v2413_v26 = vpop.f32.mrf.mxu0  ;;  %v1221_v38 = vmax.f32 %v1189_v25, 0.0 }
 0x122   :  { %v2449_v29 = vpop.f32.mrf.mxu1  ;;  %v1190_v17 = vadd.f32 %v3359_v14, %v1151_v27  ;;  %v848_v31 = vadd.f32 %v2413_v26, %v3302_v52  ;;  %2479 = vmatprep.mubr.msk.bf16.mxu0 %vm1298_vm4, %v1245_v15  ;;  %v1149_v48 = vadd.f32 %v1048_v12, %v843_v43  ;;  %v498_v52 = vadd.f32 %v3310_v60, %v3308_v59 }
 0x123   :  { %v755_v49 = vpop.f32.mrf.mxu0  ;;  %2480 = vmatmul.mubr.msk.bf16.gmra.mxu0 %vm1298_vm4, %v1246_v8  ;;  %v1219_v45 = vmax.f32 %v1187_v47, 0.0  ;;  %v514_v15 = vadd.f32 %v3320_v7, %v3318_v6 }
 0x124   :  { %v1061_v37 = vpop.f32.mrf.mxu1  ;;  %v1222_v30 = vmax.f32 %v1190_v17, 0.0  ;;  %v1154_v21 = vadd.f32 %v2449_v29, %v848_v31  ;;  %v846_v33 = vadd.f32 %v755_v49, %v3304_v55  ;;  %v1188_v34 = vadd.f32 %v3359_v14, %v1149_v48 }
 0x125   :  { %v2414_v35 = vpop.f32.mrf.mxu0 }
 0x126   :  { %v2450_v36 = vpop.f32.mrf.mxu1  ;;  %v1248_v22 = vpack.c.bf16 %v1222_v30, %v1221_v38  ;;  %v1152_v44 = vadd.f32 %v1061_v37, %v846_v33  ;;  %v849_v20 = vadd.f32 %v2414_v35, %v3306_v58  ;;  %v1220_v50 = vmax.f32 %v1188_v34, 0.0 }
 0x127   :  { %v758_v51 = vpop.f32.mrf.mxu0  ;;  %v1193_v56 = vadd.f32 %v3359_v14, %v1154_v21 }
 0x128   :  { %v1064_v54 = vpop.f32.mrf.mxu1  ;;  %v1155_v0 = vadd.f32 %v2450_v36, %v849_v20  ;;  %v847_v23 = vadd.f32 %v758_v51, %v498_v52  ;;  %v1247_v55 = vpack.c.bf16 %v1220_v50, %v1219_v45  ;;  %v1191_v3 = vadd.f32 %v3359_v14, %v1152_v44 }
 0x129   :  { %v2417_v24 = vpop.f32.mrf.mxu0  ;;  %v1225_v8 = vmax.f32 %v1193_v56, 0.0 }
 0x12a   :  { %v2453_v1 = vpop.f32.mrf.mxu1  ;;  %v1194_v40 = vadd.f32 %v3359_v14, %v1155_v0  ;;  %v1153_v59 = vadd.f32 %v1064_v54, %v847_v23  ;;  %v852_v60 = vadd.f32 %v2417_v24, %v3312_v63  ;;  %2483 = vmatprep.mubr.msk.bf16.mxu0 %vm1298_vm4, %v1247_v55  ;;  %v1223_v26 = vmax.f32 %v1191_v3, 0.0 }
 0x12b   :  { %v771_v58 = vpop.f32.mrf.mxu0  ;;  %2484 = vmatmul.mubr.msk.bf16.gmra.mxu0 %vm1298_vm4, %v1248_v22  ;;  %v530_v22 = vadd.f32 %v3330_v19, %v3328_v18 }
 0x12c   :  { %v1077_v4 = vpop.f32.mrf.mxu1  ;;  %v1226_v9 = vmax.f32 %v1194_v40, 0.0  ;;  %v1192_v11 = vadd.f32 %v3359_v14, %v1153_v59  ;;  %v850_v12 = vadd.f32 %v771_v58, %v3314_v2  ;;  %v1158_v25 = vadd.f32 %v2453_v1, %v852_v60 }
 0x12d   :  { %v2418_v27 = vpop.f32.mrf.mxu0 }
 0x12e   :  { %v2454_v43 = vpop.f32.mrf.mxu1  ;;  %v1250_v63 = vpack.c.bf16 %v1226_v9, %v1225_v8  ;;  %v1224_v29 = vmax.f32 %v1192_v11, 0.0  ;;  %v1156_v17 = vadd.f32 %v1077_v4, %v850_v12  ;;  %v853_v31 = vadd.f32 %v2418_v27, %v3316_v5 }
 0x12f   :  { %v774_v47 = vpop.f32.mrf.mxu0  ;;  %v1197_v2 = vadd.f32 %v3359_v14, %v1158_v25  ;;  %v546_v12 = vadd.f32 %v3340_v42, %v3338_v41 }
 0x130   :  { %v1080_v48 = vpop.f32.mrf.mxu1  ;;  %v1249_v49 = vpack.c.bf16 %v1224_v29, %v1223_v26  ;;  %v851_v37 = vadd.f32 %v774_v47, %v514_v15  ;;  %v1159_v38 = vadd.f32 %v2454_v43, %v853_v31  ;;  %v1195_v6 = vadd.f32 %v3359_v14, %v1156_v17 }
 0x131   :  { %v2421_v30 = vpop.f32.mrf.mxu0  ;;  %v1229_v44 = vmax.f32 %v1197_v2, 0.0 }
 0x132   :  { %v2457_v21 = vpop.f32.mrf.mxu1  ;;  %v1157_v7 = vadd.f32 %v1080_v48, %v851_v37  ;;  %v856_v33 = vadd.f32 %v2421_v30, %v3322_v10  ;;  %2487 = vmatprep.mubr.msk.bf16.mxu0 %vm1298_vm4, %v1249_v49  ;;  %v1198_v34 = vadd.f32 %v3359_v14, %v1159_v38  ;;  %v1227_v51 = vmax.f32 %v1195_v6, 0.0 }
 0x133   :  { %v787_v35 = vpop.f32.mrf.mxu0  ;;  %2488 = vmatmul.mubr.msk.bf16.gmra.mxu0 %vm1298_vm4, %v1250_v63 }
 0x134   :  { %v1093_v5 = vpop.f32.mrf.mxu1  ;;  %v1196_v36 = vadd.f32 %v3359_v14, %v1157_v7  ;;  %v854_v52 = vadd.f32 %v787_v35, %v3324_v13  ;;  %v1230_v20 = vmax.f32 %v1198_v34, 0.0  ;;  %v1162_v45 = vadd.f32 %v2457_v21, %v856_v33 }
 0x135   :  { %v2422_v50 = vpop.f32.mrf.mxu0  ;;  %v562_v35 = vadd.f32 %v3350_v62, %v3348_v61 }
 0x136   :  { %v2458_v10 = vpop.f32.mrf.mxu1  ;;  %v1228_v54 = vmax.f32 %v1196_v36, 0.0  ;;  %v857_v56 = vadd.f32 %v2422_v50, %v3326_v16  ;;  %v1160_v0 = vadd.f32 %v1093_v5, %v854_v52  ;;  %v1252_v23 = vpack.c.bf16 %v1230_v20, %v1229_v44 }
 0x137   :  { %v790_v55 = vpop.f32.mrf.mxu0  ;;  %v1201_v3 = vadd.f32 %v3359_v14, %v1162_v45 }
 0x138   :  { %v1096_v24 = vpop.f32.mrf.mxu1  ;;  %v1251_v1 = vpack.c.bf16 %v1228_v54, %v1227_v51  ;;  %v855_v13 = vadd.f32 %v790_v55, %v530_v22  ;;  %v1163_v40 = vadd.f32 %v2458_v10, %v857_v56  ;;  %v1199_v19 = vadd.f32 %v3359_v14, %v1160_v0 }
 0x139   :  { %v2425_v59 = vpop.f32.mrf.mxu0  ;;  %v1233_v15 = vmax.f32 %v1201_v3, 0.0 }
 0x13a   :  { %v2461_v18 = vpop.f32.mrf.mxu1  ;;  %v860_v60 = vadd.f32 %v2425_v59, %v3332_v28  ;;  %v1161_v58 = vadd.f32 %v1096_v24, %v855_v13  ;;  %2491 = vmatprep.mubr.msk.bf16.mxu0 %vm1298_vm4, %v1251_v1  ;;  %v1202_v16 = vadd.f32 %v3359_v14, %v1163_v40  ;;  %v1231_v26 = vmax.f32 %v1199_v19, 0.0 }
 0x13b   :  { %v803_v4 = vpop.f32.mrf.mxu0  ;;  %2492 = vmatmul.mubr.msk.bf16.gmra.mxu0 %vm1298_vm4, %v1252_v23 }
 0x13c   :  { %v1109_v8 = vpop.f32.mrf.mxu1  ;;  %v1200_v9 = vadd.f32 %v3359_v14, %v1161_v58  ;;  %v858_v11 = vadd.f32 %v803_v4, %v3334_v32  ;;  %v1234_v25 = vmax.f32 %v1202_v16, 0.0  ;;  %v1166_v27 = vadd.f32 %v2461_v18, %v860_v60  ;;  %v3450_v60 = vld [vmem:[%s3559_s10] ss:$0 sm:$0xff] }
 0x13d   :  { %v2426_v28 = vpop.f32.mrf.mxu0 }
 0x13e   :  { %v2462_v43 = vpop.f32.mrf.mxu1  ;;  %v1232_v63 = vmax.f32 %v1200_v9, 0.0  ;;  %v861_v29 = vadd.f32 %v2426_v28, %v3336_v39  ;;  %v1164_v17 = vadd.f32 %v1109_v8, %v858_v11  ;;  %v1254_v31 = vpack.c.bf16 %v1234_v25, %v1233_v15 }
 0x13f   :  { %v806_v47 = vpop.f32.mrf.mxu0  ;;  %v1205_v37 = vadd.f32 %v3359_v14, %v1166_v27 }
 0x140   :  { %v1112_v48 = vpop.f32.mrf.mxu1  ;;  %v1253_v49 = vpack.c.bf16 %v1232_v63, %v1231_v26  ;;  %v859_v32 = vadd.f32 %v806_v47, %v546_v12  ;;  %v1167_v2 = vadd.f32 %v2462_v43, %v861_v29  ;;  %v1203_v42 = vadd.f32 %v3359_v14, %v1164_v17 }
 0x141   :  { %v2429_v38 = vpop.f32.mrf.mxu0  ;;  %v1237_v5 = vmax.f32 %v1205_v37, 0.0 }
 0x142   :  { %v2465_v41 = vpop.f32.mrf.mxu1  ;;  %v864_v30 = vadd.f32 %v2429_v38, %v3342_v46  ;;  %v1165_v21 = vadd.f32 %v1112_v48, %v859_v32  ;;  %2495 = vmatprep.mubr.msk.bf16.mxu0 %vm1298_vm4, %v1253_v49  ;;  %v1206_v39 = vadd.f32 %v3359_v14, %v1167_v2  ;;  %v1235_v44 = vmax.f32 %v1203_v42, 0.0 }
 0x143   :  { %v819_v6 = vpop.f32.mrf.mxu0  ;;  %2496 = vmatmul.mubr.msk.bf16.gmra.mxu0 %vm1298_vm4, %v1254_v31 }
 0x144   :  { %v1125_v7 = vpop.f32.mrf.mxu1  ;;  %v1204_v33 = vadd.f32 %v3359_v14, %v1165_v21  ;;  %v862_v34 = vadd.f32 %v819_v6, %v3344_v53  ;;  %v1238_v36 = vmax.f32 %v1206_v39, 0.0  ;;  %v1170_v52 = vadd.f32 %v2465_v41, %v864_v30 }
 0x145   :  { %v2430_v46 = vpop.f32.mrf.mxu0 }
 0x146   :  { %v2466_v22 = vpop.f32.mrf.mxu1  ;;  %v1236_v20 = vmax.f32 %v1204_v33, 0.0  ;;  %v865_v45 = vadd.f32 %v2430_v46, %v3346_v57  ;;  %v1168_v50 = vadd.f32 %v1125_v7, %v862_v34  ;;  %v1256_v10 = vpack.c.bf16 %v1238_v36, %v1237_v5 }
 0x147   :  { %v822_v51 = vpop.f32.mrf.mxu0  ;;  %v1209_v0 = vadd.f32 %v3359_v14, %v1170_v52 }
 0x148   :  { %v1128_v54 = vpop.f32.mrf.mxu1  ;;  %v1255_v56 = vpack.c.bf16 %v1236_v20, %v1235_v44  ;;  %v863_v53 = vadd.f32 %v822_v51, %v562_v35  ;;  %v1171_v23 = vadd.f32 %v2466_v22, %v865_v45  ;;  %v1207_v61 = vadd.f32 %v3359_v14, %v1168_v50 }
 0x149   :  { %v1241_v57 = vmax.f32 %v1209_v0, 0.0 }
 0x14a   :  { %v1169_v62 = vadd.f32 %v1128_v54, %v863_v53  ;;  %2499 = vmatprep.mubr.msk.bf16.mxu0 %vm1298_vm4, %v1255_v56  ;;  %v1210_v55 = vadd.f32 %v3359_v14, %v1171_v23  ;;  %v1239_v13 = vmax.f32 %v1207_v61, 0.0 }
 0x14b   :  { %2500 = vmatmul.mubr.msk.bf16.gmra.mxu0 %vm1298_vm4, %v1256_v10 }
 0x14c   :  { %v1208_v24 = vadd.f32 %v3359_v14, %v1169_v62  ;;  %v1242_v1 = vmax.f32 %v1210_v55, 0.0 }
 0x14e   :  { %v1240_v3 = vmax.f32 %v1208_v24, 0.0  ;;  %v1258_v40 = vpack.c.bf16 %v1242_v1, %v1241_v57 }
 0x150   :  { %v1257_v59 = vpack.c.bf16 %v1240_v3, %v1239_v13 }
 0x152   :  { %2503 = vmatprep.mubr.msk.bf16.mxu0 %vm1298_vm4, %v1257_v59 }
 0x153   :  { %2504 = vmatmul.mubr.msk.bf16.gmra.mxu0 %vm1298_vm4, %v1258_v40 }
 0x1db   :  { %v2477_v18 = vpop.f32.mrf.mxu0 }
 0x1dc   :  { %v1390_v4 = vadd.f32 %v2477_v18, %v3450_v60 }
 0x1dd   :  { %v1381_v19 = vpop.f32.mrf.mxu0 }
 0x1de   :  { %v1382_v58 = vadd.f32 %v3450_v60, %v1381_v19  ;;  %v1510_v27 = vmax.f32 %v1390_v4, 0.0 }
 0x1df   :  { %v2478_v14 = vpop.f32.mrf.mxu0 }
 0x1e0   :  { %v1393_v16 = vadd.f32 %v2478_v14, %v3450_v60  ;;  %v1508_v15 = vmax.f32 %v1382_v58, 0.0 }
 0x1e1   :  { %v1384_v8 = vpop.f32.mrf.mxu0 }
 0x1e2   :  { %v1385_v9 = vadd.f32 %v3450_v60, %v1384_v8  ;;  %v1511_v11 = vmax.f32 %v1393_v16, 0.0 }
 0x1e3   :  { %v2481_v12 = vpop.f32.mrf.mxu0 }
 0x1e4   :  { %v1509_v25 = vmax.f32 %v1385_v9, 0.0  ;;  %v1541_v26 = vpack.c.bf16 %v1511_v11, %v1510_v27  ;;  %v1406_v31 = vadd.f32 %v2481_v12, %v3450_v60 }
 0x1e5   :  { %v1397_v28 = vpop.f32.mrf.mxu0 }
 0x1e6   :  { %v1540_v43 = vpack.c.bf16 %v1509_v25, %v1508_v15  ;;  %v1398_v29 = vadd.f32 %v3450_v60, %v1397_v28  ;;  %v1514_v38 = vmax.f32 %v1406_v31, 0.0 }
 0x1e7   :  { %v2482_v63 = vpop.f32.mrf.mxu0 }
 0x1e8   :  { %v1409_v17 = vadd.f32 %v2482_v63, %v3450_v60  ;;  %2515 = vmatprep.mubr.msk.bf16.mxu1 %vm1298_vm4, %v1540_v43  ;;  %v1512_v32 = vmax.f32 %v1398_v29, 0.0 }
 0x1e9   :  { %v1400_v47 = vpop.f32.mrf.mxu0  ;;  %2516 = vmatmul.mubr.msk.bf16.vlgmr.msra.gmra.mxu1 %vm1298_vm4, %v1541_v26 }
 0x1ea   :  { %v1401_v48 = vadd.f32 %v3450_v60, %v1400_v47  ;;  %v1515_v49 = vmax.f32 %v1409_v17, 0.0 }
 0x1eb   :  { %v2485_v2 = vpop.f32.mrf.mxu0 }
 0x1ec   :  { %v1513_v37 = vmax.f32 %v1401_v48, 0.0  ;;  %v1543_v30 = vpack.c.bf16 %v1515_v49, %v1514_v38  ;;  %v1422_v7 = vadd.f32 %v2485_v2, %v3450_v60 }
 0x1ed   :  { %v1413_v42 = vpop.f32.mrf.mxu0 }
 0x1ee   :  { %v1542_v41 = vpack.c.bf16 %v1513_v37, %v1512_v32  ;;  %v1414_v39 = vadd.f32 %v3450_v60, %v1413_v42  ;;  %v1518_v46 = vmax.f32 %v1422_v7, 0.0 }
 0x1ef   :  { %v2486_v21 = vpop.f32.mrf.mxu0 }
 0x1f0   :  { %2519 = vmatprep.mubr.msk.bf16.mxu1 %vm1298_vm4, %v1542_v41  ;;  %v1425_v6 = vadd.f32 %v2486_v21, %v3450_v60  ;;  %v1516_v36 = vmax.f32 %v1414_v39, 0.0 }
 0x1f1   :  { %2520 = vmatmul.mubr.msk.bf16.gmra.mxu1 %vm1298_vm4, %v1543_v30  ;;  %v1416_v33 = vpop.f32.mrf.mxu0 }
 0x1f2   :  { %v1417_v34 = vadd.f32 %v3450_v60, %v1416_v33  ;;  %v1519_v35 = vmax.f32 %v1425_v6, 0.0 }
 0x1f3   :  { %v2489_v5 = vpop.f32.mrf.mxu0 }
 0x1f4   :  { %v1517_v52 = vmax.f32 %v1417_v34, 0.0  ;;  %v1545_v20 = vpack.c.bf16 %v1519_v35, %v1518_v46  ;;  %v1438_v51 = vadd.f32 %v2489_v5, %v3450_v60 }
 0x1f5   :  { %v1429_v22 = vpop.f32.mrf.mxu0 }
 0x1f6   :  { %v1544_v44 = vpack.c.bf16 %v1517_v52, %v1516_v36  ;;  %v1430_v50 = vadd.f32 %v3450_v60, %v1429_v22  ;;  %v1522_v62 = vmax.f32 %v1438_v51, 0.0 }
 0x1f7   :  { %v2490_v45 = vpop.f32.mrf.mxu0 }
 0x1f8   :  { %v1441_v10 = vadd.f32 %v2490_v45, %v3450_v60  ;;  %2523 = vmatprep.mubr.msk.bf16.mxu1 %vm1298_vm4, %v1544_v44  ;;  %v1520_v23 = vmax.f32 %v1430_v50, 0.0 }
 0x1f9   :  { %v1432_v54 = vpop.f32.mrf.mxu0  ;;  %2524 = vmatmul.mubr.msk.bf16.gmra.mxu1 %vm1298_vm4, %v1545_v20 }
 0x1fa   :  { %v1433_v56 = vadd.f32 %v3450_v60, %v1432_v54  ;;  %v1523_v53 = vmax.f32 %v1441_v10, 0.0 }
 0x1fb   :  { %v2493_v0 = vpop.f32.mrf.mxu0 }
 0x1fc   :  { %v1521_v61 = vmax.f32 %v1433_v56, 0.0  ;;  %v1547_v57 = vpack.c.bf16 %v1523_v53, %v1522_v62  ;;  %v1454_v40 = vadd.f32 %v2493_v0, %v3450_v60  ;;  %v3503_v56 = vld [vmem:[%s3561_s12] ss:$0 sm:$0xff]  ;;  %s2710_s12 = smov [#allocation2]  }
 0x1fd   :  { %v1445_v55 = vpop.f32.mrf.mxu0  ;;  %s2071_s24 = sshll.u32 %s2710_s12, 4  ;;  %s2072_s24 = int_to_ptr.vmem [resolvable:$true] %s2071_s24 }
 0x1fe   :  { %v1546_v24 = vpack.c.bf16 %v1521_v61, %v1520_v23  ;;  %v1446_v13 = vadd.f32 %v3450_v60, %v1445_v55  ;;  %v1526_v4 = vmax.f32 %v1454_v40, 0.0  ;;  %s2687_s25 = scalar_lea.vmem %s2072_s24, 128  ;;  %p2692_p1 = scmp.lt.s32.totalorder %s2072_s24, %s2072_s24 }
 0x1ff   :  { %v2494_v1 = vpop.f32.mrf.mxu0  ;;  %p2688_p0 = scmp.ne.s32.totalorder %s2072_s24, %s2687_s25  ;;  %p2693_p2 = scmp.lt.s32.totalorder %s2687_s25, %s2687_s25 }
 0x200   :  { %v1457_v3 = vadd.f32 %v2494_v1, %v3450_v60  ;;  %2527 = vmatprep.mubr.msk.bf16.mxu1 %vm1298_vm4, %v1546_v24  ;;  %v1524_v58 = vmax.f32 %v1446_v13, 0.0 }
 0x201   :  { %v1448_v59 = vpop.f32.mrf.mxu0  ;;  %2528 = vmatmul.mubr.msk.bf16.gmra.mxu1 %vm1298_vm4, %v1547_v57  ;;  %p2694_p3 = por %p2693_p2, %p2692_p1 }
 0x202   :  { %v1449_v18 = vadd.f32 %v3450_v60, %v1448_v59  ;;  %v1527_v19 = vmax.f32 %v1457_v3, 0.0 }
 0x203   :  { %v2497_v14 = vpop.f32.mrf.mxu0  ;;  %p2695_p4 = pnand %p2694_p3, %p2688_p0 }
 0x204   :  { %v1525_v16 = vmax.f32 %v1449_v18, 0.0  ;;  %v1549_v11 = vpack.c.bf16 %v1527_v19, %v1526_v4  ;;  %v1470_v27 = vadd.f32 %v2497_v14, %v3450_v60 }
 0x205   :  { %v1461_v8 = vpop.f32.mrf.mxu0 }
 0x206   :  { %v1548_v9 = vpack.c.bf16 %v1525_v16, %v1524_v58  ;;  %v1462_v15 = vadd.f32 %v3450_v60, %v1461_v8  ;;  %v1530_v31 = vmax.f32 %v1470_v27, 0.0 }
 0x207   :  { %v2498_v12 = vpop.f32.mrf.mxu0 }
 0x208   :  { %v1473_v25 = vadd.f32 %v2498_v12, %v3450_v60  ;;  %2531 = vmatprep.mubr.msk.bf16.mxu1 %vm1298_vm4, %v1548_v9  ;;  %v1528_v29 = vmax.f32 %v1462_v15, 0.0 }
 0x209   :  { %v1464_v28 = vpop.f32.mrf.mxu0  ;;  %2532 = vmatmul.mubr.msk.bf16.gmra.mxu1 %vm1298_vm4, %v1549_v11 }
 0x20a   :  { %v1465_v43 = vadd.f32 %v3450_v60, %v1464_v28  ;;  %v1531_v26 = vmax.f32 %v1473_v25, 0.0 }
 0x20b   :  { %v2501_v63 = vpop.f32.mrf.mxu0 }
 0x20c   :  { %v1529_v17 = vmax.f32 %v1465_v43, 0.0  ;;  %v1551_v49 = vpack.c.bf16 %v1531_v26, %v1530_v31  ;;  %v1486_v38 = vadd.f32 %v2501_v63, %v3450_v60 }
 0x20d   :  { %v1477_v47 = vpop.f32.mrf.mxu0 }
 0x20e   :  { %v1550_v48 = vpack.c.bf16 %v1529_v17, %v1528_v29  ;;  %v1478_v37 = vadd.f32 %v3450_v60, %v1477_v47  ;;  %v1534_v7 = vmax.f32 %v1486_v38, 0.0 }
 0x20f   :  { %v2502_v32 = vpop.f32.mrf.mxu0 }
 0x210   :  { %v1489_v2 = vadd.f32 %v2502_v32, %v3450_v60  ;;  %2535 = vmatprep.mubr.msk.bf16.mxu1 %vm1298_vm4, %v1550_v48  ;;  %v1532_v39 = vmax.f32 %v1478_v37, 0.0 }
 0x211   :  { %v1480_v41 = vpop.f32.mrf.mxu0  ;;  %2536 = vmatmul.mubr.msk.bf16.gmra.mxu1 %vm1298_vm4, %v1551_v49 }
 0x212   :  { %v1481_v42 = vadd.f32 %v3450_v60, %v1480_v41  ;;  %v1535_v30 = vmax.f32 %v1489_v2, 0.0 }
 0x213   :  { %v2505_v21 = vpop.f32.mrf.mxu0 }
 0x214   :  { %v1533_v6 = vmax.f32 %v1481_v42, 0.0  ;;  %v1553_v35 = vpack.c.bf16 %v1535_v30, %v1534_v7  ;;  %v1502_v46 = vadd.f32 %v2505_v21, %v3450_v60 }
 0x215   :  { %v1493_v33 = vpop.f32.mrf.mxu0 }
 0x216   :  { %v1552_v34 = vpack.c.bf16 %v1533_v6, %v1532_v39  ;;  %v1494_v36 = vadd.f32 %v3450_v60, %v1493_v33  ;;  %v1538_v10 = vmax.f32 %v1502_v46, 0.0 }
 0x217   :  { %v2506_v5 = vpop.f32.mrf.mxu0 }
 0x218   :  { %v1505_v52 = vadd.f32 %v2506_v5, %v3450_v60  ;;  %2539 = vmatprep.mubr.msk.bf16.mxu1 %vm1298_vm4, %v1552_v34  ;;  %v1536_v45 = vmax.f32 %v1494_v36, 0.0 }
 0x219   :  { %v1496_v22 = vpop.f32.mrf.mxu0  ;;  %2540 = vmatmul.mubr.msk.bf16.gmra.mxu1 %vm1298_vm4, %v1553_v35 }
 0x21a   :  { %v1497_v44 = vadd.f32 %v3450_v60, %v1496_v22  ;;  %v1539_v20 = vmax.f32 %v1505_v52, 0.0 }
 0x21c   :  { %v1537_v50 = vmax.f32 %v1497_v44, 0.0  ;;  %v1555_v54 = vpack.c.bf16 %v1539_v20, %v1538_v10 }
 0x21e   :  { %v1554_v51 = vpack.c.bf16 %v1537_v50, %v1536_v45 }
 0x220   :  { %2543 = vmatprep.mubr.msk.bf16.mxu1 %vm1298_vm4, %v1554_v51 }
 0x221   :  { %2544 = vmatmul.mubr.msk.bf16.gmra.mxu1 %vm1298_vm4, %v1555_v54 }
 0x2a9   :  { %v2517_v53 = vpop.f32.mrf.mxu1 }
 0x2aa   :  { %v1686_v0 = vadd.f32 %v2517_v53, %v3503_v56 }
 0x2ab   :  { %v1677_v23 = vpop.f32.mrf.mxu1 }
 0x2ac   :  { %v1678_v60 = vadd.f32 %v3503_v56, %v1677_v23  ;;  %v2190_v55 = vmul.f32 -1.442695, %v1686_v0 }
 0x2ad   :  { %v2518_v61 = vpop.f32.mrf.mxu1 }
 0x2ae   :  { %v2188_v62 = vmul.f32 -1.442695, %v1678_v60  ;;  %v1689_v57 = vadd.f32 %v2518_v61, %v3503_v56 }
 0x2af   :  { %v1680_v24 = vpop.f32.mrf.mxu1 }
 0x2b0   :  { %2559 = vpow2.f32 %v2188_v62  ;;  %v1681_v1 = vadd.f32 %v3503_v56, %v1680_v24  ;;  %v2191_v59 = vmul.f32 -1.442695, %v1689_v57 }
 0x2b1   :  { %v2521_v13 = vpop.f32.mrf.mxu1  ;;  %2561 = vpow2.f32 %v2190_v55 }
 0x2b2   :  { %v2189_v3 = vmul.f32 -1.442695, %v1681_v1  ;;  %v1702_v8 = vadd.f32 %v2521_v13, %v3503_v56 }
 0x2b3   :  { %v1693_v40 = vpop.f32.mrf.mxu1 }
 0x2b4   :  { %2563 = vpow2.f32 %v2189_v3  ;;  %v1694_v18 = vadd.f32 %v3503_v56, %v1693_v40  ;;  %v2194_v27 = vmul.f32 -1.442695, %v1702_v8 }
 0x2b5   :  { %v2522_v19 = vpop.f32.mrf.mxu1  ;;  %2565 = vpow2.f32 %v2191_v59 }
 0x2b6   :  { %v2192_v58 = vmul.f32 -1.442695, %v1694_v18  ;;  %v1705_v28 = vadd.f32 %v2522_v19, %v3503_v56 }
 0x2b7   :  { %v1696_v14 = vpop.f32.mrf.mxu1 }
 0x2b8   :  { %v1697_v16 = vadd.f32 %v3503_v56, %v1696_v14  ;;  %2567 = vpow2.f32 %v2192_v58  ;;  %v2195_v31 = vmul.f32 -1.442695, %v1705_v28 }
 0x2b9   :  { %v2525_v4 = vpop.f32.mrf.mxu1 }
 0x2ba   :  { %v2193_v9 = vmul.f32 -1.442695, %v1697_v16  ;;  %v1718_v39 = vadd.f32 %v2525_v4, %v3503_v56 }
 0x2bb   :  { %v1709_v11 = vpop.f32.mrf.mxu1 }
 0x2bc   :  { %2569 = vpow2.f32 %v2193_v9  ;;  %v1710_v47 = vadd.f32 %v3503_v56, %v1709_v11  ;;  %v2198_v46 = vmul.f32 -1.442695, %v1718_v39 }
 0x2bd   :  { %v2560_v12 = vpop.eup %2559  ;;  %v2526_v15 = vpop.f32.mrf.mxu1 }
 0x2be   :  { %v1900_v25 = vadd.f32 1.0, %v2560_v12  ;;  %v2562_v43 = vpop.eup %2561  ;;  %v2196_v2 = vmul.f32 -1.442695, %v1710_v47  ;;  %v1721_v22 = vadd.f32 %v2526_v15, %v3503_v56 }
 0x2bf   :  { %v1712_v26 = vpop.f32.mrf.mxu1  ;;  %v1902_v48 = vadd.f32 1.0, %v2562_v43 }
 0x2c0   :  { %2571 = vrcp.f32 %v1900_v25  ;;  %v1713_v38 = vadd.f32 %v3503_v56, %v1712_v26  ;;  %v2199_v23 = vmul.f32 -1.442695, %v1721_v22 }
 0x2c1   :  { %v2564_v63 = vpop.eup %2563  ;;  %v3513_v17 = vpop.f32.mrf.mxu1  ;;  %2573 = vpow2.f32 %v2194_v27 }
 0x2c2   :  { %v1901_v29 = vadd.f32 1.0, %v2564_v63  ;;  %v2566_v32 = vpop.eup %2565  ;;  %v2197_v6 = vmul.f32 -1.442695, %v1713_v38  ;;  %v1734_v9 = vadd.f32 %v3513_v17, %v3503_v56 }
 0x2c3   :  { %v1725_v49 = vpop.f32.mrf.mxu1  ;;  %v1903_v41 = vadd.f32 1.0, %v2566_v32 }
 0x2c4   :  { %2575 = vrcp.f32 %v1901_v29  ;;  %v1726_v60 = vadd.f32 %v3503_v56, %v1725_v49  ;;  %v2202_v63 = vmul.f32 -1.442695, %v1734_v9 }
 0x2c5   :  { %v3516_v37 = vpop.f32.mrf.mxu1  ;;  %2577 = vpow2.f32 %v2195_v31  ;;  %v2568_v30 = vpop.eup %2567 }
 0x2c6   :  { %2579 = vrcp.f32 %v1902_v48  ;;  %v1904_v33 = vadd.f32 1.0, %v2568_v30  ;;  %v2200_v40 = vmul.f32 -1.442695, %v1726_v60  ;;  %v1737_v29 = vadd.f32 %v3516_v37, %v3503_v56 }
 0x2c7   :  { %v1728_v42 = vpop.f32.mrf.mxu1  ;;  %2581 = vpow2.f32 %v2196_v2 }
 0x2c8   :  { %2583 = vrcp.f32 %v1903_v41  ;;  %v1729_v59 = vadd.f32 %v3503_v56, %v1728_v42  ;;  %v2203_v42 = vmul.f32 -1.442695, %v1737_v29 }
 0x2c9   :  { %v2533_v21 = vpop.f32.mrf.mxu1  ;;  %v2570_v7 = vpop.eup %2569  ;;  %2585 = vpow2.f32 %v2197_v6 }
 0x2ca   :  { %v1750_v5 = vadd.f32 %v2533_v21, %v3503_v56  ;;  %2587 = vrcp.f32 %v1904_v33  ;;  %v1905_v45 = vadd.f32 1.0, %v2570_v7  ;;  %v2201_v11 = vmul.f32 -1.442695, %v1729_v59 }
 0x2cb   :  { %v1741_v34 = vpop.f32.mrf.mxu1 }
 0x2cc   :  { %v1742_v36 = vadd.f32 %v3503_v56, %v1741_v34  ;;  %v2206_v51 = vmul.f32 -1.442695, %v1750_v5 }
 0x2cd   :  { %v2572_v35 = vpop.eup %2571  ;;  %v2534_v52 = vpop.f32.mrf.mxu1 }
 0x2ce   :  { %1996 = vxpose.xlu0.b32.start [1/16] (narrow) %v2572_v35, 8  ;;  %v2204_v44 = vmul.f32 -1.442695, %v1742_v36  ;;  %v2574_v20 = vpop.eup %2573  ;;  %v1753_v53 = vadd.f32 %v2534_v52, %v3503_v56 }
 0x2cf   :  { %v1744_v50 = vpop.f32.mrf.mxu1  ;;  %v1906_v55 = vadd.f32 1.0, %v2574_v20 }
 0x2d0   :  { %v1745_v54 = vadd.f32 %v3503_v56, %v1744_v50  ;;  %2589 = vpow2.f32 %v2204_v44  ;;  %v2207_v1 = vmul.f32 -1.442695, %v1753_v53 }
 0x2d1   :  { %v2576_v10 = vpop.eup %2575  ;;  %v2537_v0 = vpop.f32.mrf.mxu1  ;;  %2591 = vpow2.f32 %v2198_v46 }
 0x2d2   :  { %1997 = vxpose.xlu0.b32.cont [2/16] (narrow) %v2576_v10, 8  ;;  %v2205_v61 = vmul.f32 -1.442695, %v1745_v54  ;;  %v2578_v62 = vpop.eup %2577  ;;  %2593 = vrcp.f32 %v1905_v45  ;;  %v1766_v27 = vadd.f32 %v2537_v0, %v3503_v56 }
 0x2d3   :  { %v1757_v24 = vpop.f32.mrf.mxu1  ;;  %v2580_v57 = vpop.eup %2579  ;;  %2595 = vpow2.f32 %v2206_v51  ;;  %v1907_v19 = vadd.f32 1.0, %v2578_v62 }
 0x2d4   :  { %2597 = vpow2.f32 %v2205_v61  ;;  %v1758_v13 = vadd.f32 %v3503_v56, %v1757_v24  ;;  %v2582_v18 = vpop.eup %2581  ;;  %v2210_v49 = vmul.f32 -1.442695, %v1766_v27 }
 0x2d5   :  { %v2538_v3 = vpop.f32.mrf.mxu1  ;;  %2599 = vpow2.f32 %v2199_v23  ;;  %v2584_v58 = vpop.eup %2583  ;;  %v1908_v15 = vadd.f32 1.0, %v2582_v18 }
 0x2d6   :  { %1998 = vxpose.xlu0.b32.cont [3/16] (narrow) %v2580_v57, 8  ;;  %2601 = vrcp.f32 %v1906_v55  ;;  %v2208_v4 = vmul.f32 -1.442695, %v1758_v13  ;;  %v2586_v12 = vpop.eup %2585  ;;  %v1769_v32 = vadd.f32 %v2538_v3, %v3503_v56 }
 0x2d7   :  { %v1760_v14 = vpop.f32.mrf.mxu1  ;;  %2603 = vpow2.f32 %v2207_v1  ;;  %v2588_v25 = vpop.eup %2587  ;;  %v1909_v17 = vadd.f32 1.0, %v2586_v12 }
 0x2d8   :  { %v1761_v16 = vadd.f32 %v3503_v56, %v1760_v14  ;;  %2605 = vpow2.f32 %v2200_v40  ;;  %v2211_v6 = vmul.f32 -1.442695, %v1769_v32 }
 0x2d9   :  { %v3529_v8 = vpop.f32.mrf.mxu1  ;;  %2607 = vrcp.f32 %v1907_v19 }
 0x2da   :  { %1999 = vxpose.xlu0.b32.cont [4/16] (narrow) %v2584_v58, 8  ;;  %v2209_v28 = vmul.f32 -1.442695, %v1761_v16  ;;  %2609 = vpow2.f32 %v2208_v4  ;;  %v1782_v54 = vadd.f32 %v3529_v8, %v3503_v56 }
 0x2db   :  { %v1773_v43 = vpop.f32.mrf.mxu1  ;;  %2611 = vpow2.f32 %v2201_v11 }
 0x2dc   :  { %2613 = vrcp.f32 %v1908_v15  ;;  %v1774_v7 = vadd.f32 %v3503_v56, %v1773_v43  ;;  %v2214_v57 = vmul.f32 -1.442695, %v1782_v54 }
 0x2dd   :  { %v2590_v26 = vpop.eup %2589  ;;  %2615 = vpow2.f32 %v2209_v28  ;;  %v2542_v38 = vpop.f32.mrf.mxu1 }
 0x2de   :  { %2000 = vxpose.xlu0.b32.cont [5/16] (narrow) %v2588_v25, 8  ;;  %v2592_v31 = vpop.eup %2591  ;;  %v1916_v47 = vadd.f32 1.0, %v2590_v26  ;;  %v2212_v46 = vmul.f32 -1.442695, %v1774_v7  ;;  %v1785_v1 = vadd.f32 %v2542_v38, %v3503_v56 }
 0x2df   :  { %v2594_v48 = vpop.eup %2593  ;;  %v1910_v21 = vadd.f32 1.0, %v2592_v31  ;;  %v1776_v34 = vpop.f32.mrf.mxu1 }
 0x2e0   :  { %v2596_v2 = vpop.eup %2595  ;;  %2617 = vrcp.f32 %v1916_v47  ;;  %v1777_v22 = vadd.f32 %v3503_v56, %v1776_v34  ;;  %v2215_v58 = vmul.f32 -1.442695, %v1785_v1 }
 0x2e1   :  { %v2598_v41 = vpop.eup %2597  ;;  %2619 = vpow2.f32 %v2202_v63  ;;  %v1918_v33 = vadd.f32 1.0, %v2596_v2  ;;  %v2545_v20 = vpop.f32.mrf.mxu1 }
 0x2e2   :  { %2001 = vxpose.xlu0.b32.cont [6/16] (narrow) %v2594_v48, 8  ;;  %v2600_v30 = vpop.eup %2599  ;;  %2621 = vrcp.f32 %v1909_v17  ;;  %v1917_v37 = vadd.f32 1.0, %v2598_v41  ;;  %v2213_v53 = vmul.f32 -1.442695, %v1777_v22  ;;  %v1798_v29 = vadd.f32 %v2545_v20, %v3503_v56 }
 0x2e3   :  { %v2602_v39 = vpop.eup %2601  ;;  %2623 = vpow2.f32 %v2210_v49  ;;  %v1911_v36 = vadd.f32 1.0, %v2600_v30  ;;  %v1789_v60 = vpop.f32.mrf.mxu1 }
 0x2e4   :  { %2625 = vrcp.f32 %v1917_v37  ;;  %v2604_v35 = vpop.eup %2603  ;;  %v1790_v16 = vadd.f32 %v3503_v56, %v1789_v60  ;;  %v2218_v32 = vmul.f32 -1.442695, %v1798_v29 }
 0x2e5   :  { %2627 = vpow2.f32 %v2203_v42  ;;  %v2606_v5 = vpop.eup %2605  ;;  %v1919_v44 = vadd.f32 1.0, %v2604_v35  ;;  %v2546_v40 = vpop.f32.mrf.mxu1 }
 0x2e6   :  { %2002 = vxpose.xlu0.b32.cont [7/16] (narrow) %v2602_v39, 8  ;;  %2629 = vrcp.f32 %v1910_v21  ;;  %v2608_v52 = vpop.eup %2607  ;;  %v1912_v10 = vadd.f32 1.0, %v2606_v5  ;;  %v2216_v25 = vmul.f32 -1.442695, %v1790_v16  ;;  %v1801_v2 = vadd.f32 %v2546_v40, %v3503_v56 }
 0x2e7   :  { %2631 = vpow2.f32 %v2211_v6  ;;  %v2610_v45 = vpop.eup %2609  ;;  %v1792_v9 = vpop.f32.mrf.mxu1 }
 0x2e8   :  { %2633 = vrcp.f32 %v1918_v33  ;;  %v2612_v50 = vpop.eup %2611  ;;  %v1920_v23 = vadd.f32 1.0, %v2610_v45  ;;  %v1793_v27 = vadd.f32 %v3503_v56, %v1792_v9  ;;  %v2219_v21 = vmul.f32 -1.442695, %v1801_v2 }
 0x2e9   :  { %2635 = vrcp.f32 %v1911_v36  ;;  %v2614_v51 = vpop.eup %2613  ;;  %v1913_v55 = vadd.f32 1.0, %v2612_v50 }
 0x2ea   :  { %2003 = vxpose.xlu0.b32.cont [8/16] (narrow) %v2608_v52, 8  ;;  %2637 = vpow2.f32 %v2212_v46  ;;  %v2616_v0 = vpop.eup %2615  ;;  %v2217_v31 = vmul.f32 -1.442695, %v1793_v27 }
 0x2eb   :  { %2639 = vrcp.f32 %v1919_v44  ;;  %v1921_v3 = vadd.f32 1.0, %v2616_v0 }
 0x2ec   :  { %2641 = vrcp.f32 %v1912_v10 }
 0x2ed   :  { %v2618_v61 = vpop.eup %2617  ;;  %2643 = vpow2.f32 %v2213_v53 }
 0x2ee   :  { %2004 = vxpose.xlu0.b32.cont [9/16] (narrow) %v2614_v51, 8  ;;  %v2620_v62 = vpop.eup %2619  ;;  %2028 = vxpose.xlu1.b32.start [1/16] (narrow) %v2618_v61, 8  ;;  %2645 = vrcp.f32 %v1920_v23 }
 0x2ef   :  { %v2622_v24 = vpop.eup %2621  ;;  %v1914_v19 = vadd.f32 1.0, %v2620_v62  ;;  %2647 = vrcp.f32 %v1913_v55 }
 0x2f0   :  { %v2624_v13 = vpop.eup %2623  ;;  %2649 = vpow2.f32 %v2214_v57 }
 0x2f1   :  { %v2626_v59 = vpop.eup %2625  ;;  %v1922_v8 = vadd.f32 1.0, %v2624_v13  ;;  %2651 = vrcp.f32 %v1921_v3 }
 0x2f2   :  { %2005 = vxpose.xlu0.b32.cont [10/16] (narrow) %v2622_v24, 8  ;;  %v2628_v18 = vpop.eup %2627  ;;  %2029 = vxpose.xlu1.b32.cont [2/16] (narrow) %v2626_v59, 8  ;;  %2653 = vrcp.f32 %v1914_v19 }
 0x2f3   :  { %v2630_v14 = vpop.eup %2629  ;;  %v1915_v12 = vadd.f32 1.0, %v2628_v18  ;;  %2655 = vpow2.f32 %v2215_v58 }
 0x2f4   :  { %v2632_v4 = vpop.eup %2631  ;;  %2657 = vrcp.f32 %v1922_v8 }
 0x2f5   :  { %v2634_v11 = vpop.eup %2633  ;;  %v1923_v43 = vadd.f32 1.0, %v2632_v4  ;;  %2659 = vrcp.f32 %v1915_v12 }
 0x2f6   :  { %2006 = vxpose.xlu0.b32.cont [11/16] (narrow) %v2630_v14, 8  ;;  %2030 = vxpose.xlu1.b32.cont [3/16] (narrow) %v2634_v11, 8  ;;  %v2636_v15 = vpop.eup %2635  ;;  %2661 = vpow2.f32 %v2216_v25 }
 0x2f7   :  { %v2638_v28 = vpop.eup %2637  ;;  %2663 = vrcp.f32 %v1923_v43 }
 0x2f8   :  { %v2640_v26 = vpop.eup %2639  ;;  %v1924_v47 = vadd.f32 1.0, %v2638_v28  ;;  %2665 = vpow2.f32 %v2217_v31 }
 0x2f9   :  { %v2642_v63 = vpop.eup %2641 }
 0x2fa   :  { %2007 = vxpose.xlu0.b32.cont [12/16] (narrow) %v2636_v15, 8  ;;  %2031 = vxpose.xlu1.b32.cont [4/16] (narrow) %v2640_v26, 8  ;;  %v2644_v17 = vpop.eup %2643  ;;  %2667 = vrcp.f32 %v1924_v47 }
 0x2fb   :  { %v2646_v48 = vpop.eup %2645  ;;  %v1925_v41 = vadd.f32 1.0, %v2644_v17  ;;  %2669 = vpow2.f32 %v2218_v32 }
 0x2fc   :  { %v2648_v49 = vpop.eup %2647 }
 0x2fd   :  { %v2650_v38 = vpop.eup %2649  ;;  %2671 = vrcp.f32 %v1925_v41 }
 0x2fe   :  { %2008 = vxpose.xlu0.b32.cont [13/16] (narrow) %v2642_v63, 8  ;;  %2032 = vxpose.xlu1.b32.cont [5/16] (narrow) %v2646_v48, 8  ;;  %v2652_v42 = vpop.eup %2651  ;;  %v1926_v39 = vadd.f32 1.0, %v2650_v38  ;;  %2673 = vpow2.f32 %v2219_v21 }
 0x2ff   :  { %v2654_v30 = vpop.eup %2653 }
 0x300   :  { %v2656_v37 = vpop.eup %2655  ;;  %2675 = vrcp.f32 %v1926_v39 }
 0x301   :  { %v2658_v6 = vpop.eup %2657  ;;  %v1927_v56 = vadd.f32 1.0, %v2656_v37 }
 0x302   :  { %2009 = vxpose.xlu0.b32.cont [14/16] (narrow) %v2648_v49, 8  ;;  %2033 = vxpose.xlu1.b32.cont [6/16] (narrow) %v2652_v42, 8  ;;  %v2660_v7 = vpop.eup %2659 }
 0x303   :  { %v2662_v33 = vpop.eup %2661  ;;  %2677 = vrcp.f32 %v1927_v56 }
 0x304   :  { %v2664_v34 = vpop.eup %2663  ;;  %v1928_v5 = vadd.f32 1.0, %v2662_v33 }
 0x305   :  { %v2666_v35 = vpop.eup %2665 }
 0x306   :  { %2010 = vxpose.xlu0.b32.cont [15/16] (narrow) %v2654_v30, 8  ;;  %2034 = vxpose.xlu1.b32.cont [7/16] (narrow) %v2658_v6, 8  ;;  %2679 = vrcp.f32 %v1928_v5  ;;  %v1929_v46 = vadd.f32 1.0, %v2666_v35 }
 0x307   :  { %v2668_v36 = vpop.eup %2667 }
 0x308   :  { %v2670_v52 = vpop.eup %2669  ;;  %2681 = vrcp.f32 %v1929_v46 }
 0x309   :  { %v1930_v20 = vadd.f32 1.0, %v2670_v52 }
 0x30a   :  { %2011 = vxpose.xlu0.b32.end [16/16] (narrow) %v2660_v7, 8  ;;  %2035 = vxpose.xlu1.b32.cont [8/16] (narrow) %v2664_v34, 8  ;;  %v2672_v22 = vpop.eup %2671 }
 0x30b   :  { %v2674_v44 = vpop.eup %2673  ;;  %2683 = vrcp.f32 %v1930_v20 }
 0x30c   :  { %v1931_v50 = vadd.f32 1.0, %v2674_v44 }
 0x30d   :  { %v2676_v45 = vpop.eup %2675 }
 0x30e   :  { %2036 = vxpose.xlu1.b32.cont [9/16] (narrow) %v2668_v36, 8  ;;  %2685 = vrcp.f32 %v1931_v50 }
 0x310   :  { %v2678_v10 = vpop.eup %2677 }
 0x312   :  { %2037 = vxpose.xlu1.b32.cont [10/16] (narrow) %v2672_v22, 8 }
 0x313   :  { %v2680_v51 = vpop.eup %2679 }
 0x315   :  { %v2682_v54 = vpop.eup %2681 }
 0x316   :  { %2038 = vxpose.xlu1.b32.cont [11/16] (narrow) %v2676_v45, 8 }
 0x318   :  { %v2684_v53 = vpop.eup %2683 }
 0x31a   :  { %2039 = vxpose.xlu1.b32.cont [12/16] (narrow) %v2678_v10, 8 }
 0x31b   :  { %v2686_v0 = vpop.eup %2685 }
 0x31e   :  { %2040 = vxpose.xlu1.b32.cont [13/16] (narrow) %v2680_v51, 8 }
 0x322   :  { %2041 = vxpose.xlu1.b32.cont [14/16] (narrow) %v2682_v54, 8 }
 0x326   :  { %2042 = vxpose.xlu1.b32.cont [15/16] (narrow) %v2684_v53, 8 }
 0x32a   :  { %2043 = vxpose.xlu1.b32.end [16/16] (narrow) %v2686_v0, 8 }
 0x34a   :  { %v2012_v23 = vpop.trf.xlu0 }
 0x36a   :  { %v2044_v60 = vpop.trf.xlu1 }
 0x36b   :  { %v2062_v61 = vcombine.low %v2012_v23, %v2044_v60 }
 0x36d   :  { %2064 = vst [vmem:[#allocation2] sm:$0x77] %v2062_v61 }
 0x36e   :  { %2698 = shalt.err (!%p2695_p4)
}
 0x36f   :  { %2074 = dma.vmem_to_hbm [thread:$0]  %s2072_s24, 128, %s3562_s13, [#allocation3]  }
 0x370   :  { %2707 = dma.done.wait [#allocation3], 128  }
 0x371   :  { %2708 = vsyncadd [#allocation3], 4294967168 }
 0x372   :  { %2078 = vsyncpa [#allocation3], 1 }

</bundles_post_ra>
